<compile_context>
chip_gen: v6e
topology: v6e:2x2x1
jax: 0.10.0
libtpu: 0.0.40
codegen_flags: <defaults>
</compile_context>

<pallas_src>
import jax
import jax.numpy as jnp
from jax.experimental import pallas as pl
from jax.experimental.pallas import tpu as pltpu

LN_EPS = 1e-5


def _round_up(x, m):
    return (x + m - 1) // m * m


def _layernorm(h, gamma, beta):
    mu = jnp.mean(h, axis=-1, keepdims=True)
    var = jnp.mean((h - mu) * (h - mu), axis=-1, keepdims=True)
    return (h - mu) * jax.lax.rsqrt(var + LN_EPS) * gamma + beta


def head_kernel(x_ref, w1_ref, w2_ref, wc_ref, vec_ref, out_ref):
    H = w1_ref.shape[0]
    D = w2_ref.shape[1]
    C_pad = out_ref.shape[-1]

    # Unpack the single f32 vector slab (8, H + D):
    #   cols [0, H)     : row0=b1, row1=g1, row2=be1, row3[:C_pad]=bc
    #   cols [H, H + D) : row0=b2, row1=g2, row2=be2
    vecs = vec_ref[...]
    b1, g1, be1 = vecs[0:1, :H], vecs[1:2, :H], vecs[2:3, :H]
    bc = vecs[3:4, :C_pad]
    b2, g2, be2 = vecs[0:1, H:H + D], vecs[1:2, H:H + D], vecs[2:3, H:H + D]

    # fc1: bf16 MXU inputs, f32 accumulate; LayerNorm + ReLU in f32.
    x = x_ref[...].astype(jnp.bfloat16)
    h = jnp.dot(x, w1_ref[...], preferred_element_type=jnp.float32) + b1
    h = jnp.maximum(_layernorm(h, g1, be1), 0.0)

    # fc2 + LayerNorm + ReLU.
    h = jnp.dot(h.astype(jnp.bfloat16), w2_ref[...],
                preferred_element_type=jnp.float32) + b2
    h = jnp.maximum(_layernorm(h, g2, be2), 0.0)

    # classifier (lane-padded logits; pad columns carry zero weight/bias).
    out_ref[...] = jnp.dot(h.astype(jnp.bfloat16), wc_ref[...],
                           preferred_element_type=jnp.float32) + bc


def sentiment_head_forward(x, params, n_classes, batch_tile=256):
    """x: (B, 768) f32 pooled features. Returns (B, n_classes) f32 logits."""
    B, H = x.shape
    D = params["w2"].shape[1]
    C_pad = params["wc"].shape[1]

    # Batch tiling: tile rows are multiples of 8 sublanes; weights replicated.
    bt = min(batch_tile, _round_up(B, 8))
    B_pad = _round_up(B, bt)
    if B_pad != B:
        x = jnp.pad(x, ((0, B_pad - B), (0, 0)))
    n_tiles = B_pad // bt

    def rep(shape):  # full-array block, identical for every batch tile
        return pl.BlockSpec(shape, lambda i: (0, 0), memory_space=pltpu.VMEM)

    flops = 2 * B_pad * (H * H + H * D + D * C_pad)
    bytes_accessed = (
        x.size * x.dtype.itemsize
        + sum(params[k].size * params[k].dtype.itemsize
              for k in ("w1", "w2", "wc", "vecs"))
        + B_pad * C_pad * 4)

    out_padded = pl.pallas_call(
        head_kernel,
        out_shape=jax.ShapeDtypeStruct((B_pad, C_pad), jnp.float32),
        grid=(n_tiles,),
        in_specs=[
            pl.BlockSpec((bt, H), lambda i: (i, 0), memory_space=pltpu.VMEM),
            rep((H, H)),          # w1 (bf16)
            rep((H, D)),          # w2 (bf16)
            rep((D, C_pad)),      # wc (bf16)
            rep((8, H + D)),      # packed bias/gamma/beta/bc slab (f32)
        ],
        out_specs=pl.BlockSpec((bt, C_pad), lambda i: (i, 0),
                               memory_space=pltpu.VMEM),
        compiler_params=pltpu.CompilerParams(
            dimension_semantics=("parallel",)),
        cost_estimate=pl.CostEstimate(flops=flops,
                                      transcendentals=2 * B_pad,
                                      bytes_accessed=bytes_accessed),
    )(x, params["w1"], params["w2"], params["wc"], params["vecs"])

    return out_padded[:B, :n_classes]


def make_params(key, hidden=768, dim=256, n_classes=3, c_pad=128):
    """Deterministic synthetic parameters matching the PyTorch module shapes."""
    ks = jax.random.split(key, 6)
    s1 = 1.0 / jnp.sqrt(hidden)
    sc = 1.0 / jnp.sqrt(dim)

    w1 = jax.random.uniform(ks[0], (hidden, hidden), jnp.float32, -s1, s1)
    b1 = jax.random.uniform(ks[1], (hidden,), jnp.float32, -s1, s1)
    w2 = jax.random.uniform(ks[2], (hidden, dim), jnp.float32, -s1, s1)
    b2 = jax.random.uniform(ks[3], (dim,), jnp.float32, -s1, s1)
    wc_real = jax.random.uniform(ks[4], (dim, n_classes), jnp.float32, -sc, sc)
    bc_real = jax.random.uniform(ks[5], (n_classes,), jnp.float32, -sc, sc)

    g1 = jnp.ones((hidden,), jnp.float32)
    be1 = jnp.zeros((hidden,), jnp.float32)
    g2 = jnp.ones((dim,), jnp.float32)
    be2 = jnp.zeros((dim,), jnp.float32)

    # Lane-pad classifier weights/bias to c_pad columns (zeros in the pad).
    wc = jnp.zeros((dim, c_pad), jnp.float32).at[:, :n_classes].set(wc_real)
    bc = jnp.zeros((c_pad,), jnp.float32).at[:n_classes].set(bc_real)

    # Pack all small per-feature vectors into ONE (8, hidden+dim) f32 slab.
    vecs = jnp.zeros((8, hidden + dim), jnp.float32)
    vecs = vecs.at[0, :hidden].set(b1).at[1, :hidden].set(g1)
    vecs = vecs.at[2, :hidden].set(be1).at[3, :c_pad].set(bc)
    vecs = vecs.at[0, hidden:].set(b2).at[1, hidden:].set(g2)
    vecs = vecs.at[2, hidden:].set(be2)

    return {
        "w1": w1.astype(jnp.bfloat16),
        "w2": w2.astype(jnp.bfloat16),
        "wc": wc.astype(jnp.bfloat16),
        "vecs": vecs,
    }


def reference_forward(x, params, n_classes):
    """Pure-JAX reference with identical numerics (bf16 MXU inputs, f32 acc)."""
    H = params["w1"].shape[0]
    D = params["w2"].shape[1]
    c_pad = params["wc"].shape[1]
    vecs = params["vecs"]
    b1, g1, be1 = vecs[0:1, :H], vecs[1:2, :H], vecs[2:3, :H]
    bc = vecs[3:4, :c_pad]
    b2, g2, be2 = vecs[0:1, H:H + D], vecs[1:2, H:H + D], vecs[2:3, H:H + D]

    h = jnp.dot(x.astype(jnp.bfloat16), params["w1"],
                preferred_element_type=jnp.float32) + b1
    h = jnp.maximum(_layernorm(h, g1, be1), 0.0)
    h = jnp.dot(h.astype(jnp.bfloat16), params["w2"],
                preferred_element_type=jnp.float32) + b2
    h = jnp.maximum(_layernorm(h, g2, be2), 0.0)
    out = jnp.dot(h.astype(jnp.bfloat16), params["wc"],
                  preferred_element_type=jnp.float32) + bc
    return out[:, :n_classes]


if __name__ == "__main__":
    B, HIDDEN, DIM, N_CLASSES = 8, 768, 256, 3

    key = jax.random.PRNGKey(0)
    kx, kp = jax.random.split(key)
    # x stands in for the RoBERTa pooled output (batch, 768).
    x = jax.random.normal(kx, (B, HIDDEN), jnp.float32)
    params = make_params(kp, hidden=HIDDEN, dim=DIM, n_classes=N_CLASSES)

    logits = sentiment_head_forward(x, params, N_CLASSES)
    logits = jax.block_until_ready(logits)

    ref = reference_forward(x, params, N_CLASSES)
    assert logits.shape == (B, N_CLASSES)
    assert jnp.allclose(logits, ref, atol=1e-3, rtol=1e-3), "mismatch vs reference"

    print("KERNEL_OK")
</pallas_src>

<mosaic_0001>
module attributes {stable_mosaic.version = 11 : i64} {
  func.func @head_kernel(%arg0: i32, %arg1: memref<8x768xf32, #tpu.memory_space<vmem>>, %arg2: memref<768x768xbf16, #tpu.memory_space<vmem>>, %arg3: memref<768x256xbf16, #tpu.memory_space<vmem>>, %arg4: memref<256x128xbf16, #tpu.memory_space<vmem>>, %arg5: memref<8x1024xf32, #tpu.memory_space<vmem>>, %arg6: memref<8x128xf32, #tpu.memory_space<vmem>>) attributes {dimension_semantics = [#tpu.dimension_semantics<parallel>], iteration_bounds = array<i64: 1>, scalar_prefetch = 0 : i64, scratch_operands = 0 : i64, tpu.core_type = #tpu.core_type<tc>, window_params = [{transform_indices = @transform_0, window_bounds = array<i64: 8, 768>}, {pipeline_mode = #tpu.pipeline_mode<synchronous>, transform_indices = @transform_1, window_bounds = array<i64: 768, 768>}, {pipeline_mode = #tpu.pipeline_mode<synchronous>, transform_indices = @transform_2, window_bounds = array<i64: 768, 256>}, {pipeline_mode = #tpu.pipeline_mode<synchronous>, transform_indices = @transform_3, window_bounds = array<i64: 256, 128>}, {pipeline_mode = #tpu.pipeline_mode<synchronous>, transform_indices = @transform_4, window_bounds = array<i64: 8, 1024>}, {transform_indices = @transform_5, window_bounds = array<i64: 8, 128>}]} {
    %c0 = arith.constant 0 : index
    %c0_0 = arith.constant 0 : index
    %0 = vector.load %arg5[%c0, %c0_0] : memref<8x1024xf32, #tpu.memory_space<vmem>>, vector<8x1024xf32>
    %1 = vector.extract_strided_slice %0 {offsets = [0, 0], sizes = [1, 768], strides = [1, 1]} : vector<8x1024xf32> to vector<1x768xf32>
    %2 = vector.extract_strided_slice %0 {offsets = [1, 0], sizes = [1, 768], strides = [1, 1]} : vector<8x1024xf32> to vector<1x768xf32>
    %3 = vector.extract_strided_slice %0 {offsets = [2, 0], sizes = [1, 768], strides = [1, 1]} : vector<8x1024xf32> to vector<1x768xf32>
    %4 = vector.extract_strided_slice %0 {offsets = [3, 0], sizes = [1, 128], strides = [1, 1]} : vector<8x1024xf32> to vector<1x128xf32>
    %5 = vector.extract_strided_slice %0 {offsets = [0, 768], sizes = [1, 256], strides = [1, 1]} : vector<8x1024xf32> to vector<1x256xf32>
    %6 = vector.extract_strided_slice %0 {offsets = [1, 768], sizes = [1, 256], strides = [1, 1]} : vector<8x1024xf32> to vector<1x256xf32>
    %7 = vector.extract_strided_slice %0 {offsets = [2, 768], sizes = [1, 256], strides = [1, 1]} : vector<8x1024xf32> to vector<1x256xf32>
    %c0_1 = arith.constant 0 : index
    %c0_2 = arith.constant 0 : index
    %8 = vector.load %arg1[%c0_1, %c0_2] : memref<8x768xf32, #tpu.memory_space<vmem>>, vector<8x768xf32>
    %9 = arith.truncf %8 : vector<8x768xf32> to vector<8x768xbf16>
    %c0_3 = arith.constant 0 : index
    %c0_4 = arith.constant 0 : index
    %10 = vector.load %arg2[%c0_3, %c0_4] : memref<768x768xbf16, #tpu.memory_space<vmem>>, vector<768x768xbf16>
    %cst = arith.constant dense<0.000000e+00> : vector<8x768xf32>
    %11 = tpu.matmul %9, %10, %cst {dimension_numbers = #tpu.dot_dimension_numbers<[1], [0], [0], [1], [0, 0, 1, 1], [], []>} : vector<8x768xbf16>, vector<768x768xbf16>, vector<8x768xf32> -> vector<8x768xf32>
    %12 = vector.broadcast %1 : vector<1x768xf32> to vector<8x768xf32>
    %13 = arith.addf %11, %12 : vector<8x768xf32>
    %cst_5 = arith.constant dense<0.000000e+00> : vector<8xf32>
    %14 = vector.multi_reduction <add>, %13, %cst_5 [1] : vector<8x768xf32> to vector<8xf32>
    %15 = vector.shape_cast %14 : vector<8xf32> to vector<8x1xf32>
    %cst_6 = arith.constant 7.680000e+02 : f32
    %16 = vector.broadcast %cst_6 : f32 to vector<8x1xf32>
    %17 = arith.divf %15, %16 : vector<8x1xf32>
    %18 = vector.broadcast %17 : vector<8x1xf32> to vector<8x768xf32>
    %19 = arith.subf %13, %18 : vector<8x768xf32>
    %20 = vector.broadcast %17 : vector<8x1xf32> to vector<8x768xf32>
    %21 = arith.subf %13, %20 : vector<8x768xf32>
    %22 = arith.mulf %19, %21 : vector<8x768xf32>
    %cst_7 = arith.constant dense<0.000000e+00> : vector<8xf32>
    %23 = vector.multi_reduction <add>, %22, %cst_7 [1] : vector<8x768xf32> to vector<8xf32>
    %24 = vector.shape_cast %23 : vector<8xf32> to vector<8x1xf32>
    %cst_8 = arith.constant 7.680000e+02 : f32
    %25 = vector.broadcast %cst_8 : f32 to vector<8x1xf32>
    %26 = arith.divf %24, %25 : vector<8x1xf32>
    %27 = vector.broadcast %17 : vector<8x1xf32> to vector<8x768xf32>
    %28 = arith.subf %13, %27 : vector<8x768xf32>
    %cst_9 = arith.constant 9.99999974E-6 : f32
    %29 = vector.broadcast %cst_9 : f32 to vector<8x1xf32>
    %30 = arith.addf %26, %29 : vector<8x1xf32>
    %31 = math.rsqrt %30 : vector<8x1xf32>
    %32 = vector.broadcast %31 : vector<8x1xf32> to vector<8x768xf32>
    %33 = arith.mulf %28, %32 : vector<8x768xf32>
    %34 = vector.broadcast %2 : vector<1x768xf32> to vector<8x768xf32>
    %35 = arith.mulf %33, %34 : vector<8x768xf32>
    %36 = vector.broadcast %3 : vector<1x768xf32> to vector<8x768xf32>
    %37 = arith.addf %35, %36 : vector<8x768xf32>
    %cst_10 = arith.constant 0.000000e+00 : f32
    %38 = vector.broadcast %cst_10 : f32 to vector<8x768xf32>
    %39 = arith.maximumf %37, %38 : vector<8x768xf32>
    %40 = arith.truncf %39 : vector<8x768xf32> to vector<8x768xbf16>
    %c0_11 = arith.constant 0 : index
    %c0_12 = arith.constant 0 : index
    %41 = vector.load %arg3[%c0_11, %c0_12] : memref<768x256xbf16, #tpu.memory_space<vmem>>, vector<768x256xbf16>
    %cst_13 = arith.constant dense<0.000000e+00> : vector<8x256xf32>
    %42 = tpu.matmul %40, %41, %cst_13 {dimension_numbers = #tpu.dot_dimension_numbers<[1], [0], [0], [1], [0, 0, 1, 1], [], []>} : vector<8x768xbf16>, vector<768x256xbf16>, vector<8x256xf32> -> vector<8x256xf32>
    %43 = vector.broadcast %5 : vector<1x256xf32> to vector<8x256xf32>
    %44 = arith.addf %42, %43 : vector<8x256xf32>
    %cst_14 = arith.constant dense<0.000000e+00> : vector<8xf32>
    %45 = vector.multi_reduction <add>, %44, %cst_14 [1] : vector<8x256xf32> to vector<8xf32>
    %46 = vector.shape_cast %45 : vector<8xf32> to vector<8x1xf32>
    %cst_15 = arith.constant 2.560000e+02 : f32
    %47 = vector.broadcast %cst_15 : f32 to vector<8x1xf32>
    %48 = arith.divf %46, %47 : vector<8x1xf32>
    %49 = vector.broadcast %48 : vector<8x1xf32> to vector<8x256xf32>
    %50 = arith.subf %44, %49 : vector<8x256xf32>
    %51 = vector.broadcast %48 : vector<8x1xf32> to vector<8x256xf32>
    %52 = arith.subf %44, %51 : vector<8x256xf32>
    %53 = arith.mulf %50, %52 : vector<8x256xf32>
    %cst_16 = arith.constant dense<0.000000e+00> : vector<8xf32>
    %54 = vector.multi_reduction <add>, %53, %cst_16 [1] : vector<8x256xf32> to vector<8xf32>
    %55 = vector.shape_cast %54 : vector<8xf32> to vector<8x1xf32>
    %cst_17 = arith.constant 2.560000e+02 : f32
    %56 = vector.broadcast %cst_17 : f32 to vector<8x1xf32>
    %57 = arith.divf %55, %56 : vector<8x1xf32>
    %58 = vector.broadcast %48 : vector<8x1xf32> to vector<8x256xf32>
    %59 = arith.subf %44, %58 : vector<8x256xf32>
    %cst_18 = arith.constant 9.99999974E-6 : f32
    %60 = vector.broadcast %cst_18 : f32 to vector<8x1xf32>
    %61 = arith.addf %57, %60 : vector<8x1xf32>
    %62 = math.rsqrt %61 : vector<8x1xf32>
    %63 = vector.broadcast %62 : vector<8x1xf32> to vector<8x256xf32>
    %64 = arith.mulf %59, %63 : vector<8x256xf32>
    %65 = vector.broadcast %6 : vector<1x256xf32> to vector<8x256xf32>
    %66 = arith.mulf %64, %65 : vector<8x256xf32>
    %67 = vector.broadcast %7 : vector<1x256xf32> to vector<8x256xf32>
    %68 = arith.addf %66, %67 : vector<8x256xf32>
    %cst_19 = arith.constant 0.000000e+00 : f32
    %69 = vector.broadcast %cst_19 : f32 to vector<8x256xf32>
    %70 = arith.maximumf %68, %69 : vector<8x256xf32>
    %71 = arith.truncf %70 : vector<8x256xf32> to vector<8x256xbf16>
    %c0_20 = arith.constant 0 : index
    %c0_21 = arith.constant 0 : index
    %72 = vector.load %arg4[%c0_20, %c0_21] : memref<256x128xbf16, #tpu.memory_space<vmem>>, vector<256x128xbf16>
    %cst_22 = arith.constant dense<0.000000e+00> : vector<8x128xf32>
    %73 = tpu.matmul %71, %72, %cst_22 {dimension_numbers = #tpu.dot_dimension_numbers<[1], [0], [0], [1], [0, 0, 1, 1], [], []>} : vector<8x256xbf16>, vector<256x128xbf16>, vector<8x128xf32> -> vector<8x128xf32>
    %74 = vector.broadcast %4 : vector<1x128xf32> to vector<8x128xf32>
    %75 = arith.addf %73, %74 : vector<8x128xf32>
    %c0_23 = arith.constant 0 : index
    %c0_24 = arith.constant 0 : index
    %76 = vector.load %arg6[%c0_23, %c0_24] : memref<8x128xf32, #tpu.memory_space<vmem>>, vector<8x128xf32>
    tpu.vector_store %arg6[%c0_23, %c0_24], %75 {strides = array<i32>} : memref<8x128xf32, #tpu.memory_space<vmem>>, vector<8x128xf32>,
    return
  }
  func.func @transform_0(%arg0: i32) -> (i32, i32) {
    %c0_i32 = arith.constant 0 : i32
    %c0_i32_0 = arith.constant 0 : i32
    return %arg0, %c0_i32 : i32, i32
  }
  func.func @transform_1(%arg0: i32) -> (i32, i32) {
    %c0_i32 = arith.constant 0 : i32
    %c0_i32_0 = arith.constant 0 : i32
    %c0_i32_1 = arith.constant 0 : i32
    return %c0_i32, %c0_i32_0 : i32, i32
  }
  func.func @transform_2(%arg0: i32) -> (i32, i32) {
    %c0_i32 = arith.constant 0 : i32
    %c0_i32_0 = arith.constant 0 : i32
    %c0_i32_1 = arith.constant 0 : i32
    return %c0_i32, %c0_i32_0 : i32, i32
  }
  func.func @transform_3(%arg0: i32) -> (i32, i32) {
    %c0_i32 = arith.constant 0 : i32
    %c0_i32_0 = arith.constant 0 : i32
    %c0_i32_1 = arith.constant 0 : i32
    return %c0_i32, %c0_i32_0 : i32, i32
  }
  func.func @transform_4(%arg0: i32) -> (i32, i32) {
    %c0_i32 = arith.constant 0 : i32
    %c0_i32_0 = arith.constant 0 : i32
    %c0_i32_1 = arith.constant 0 : i32
    return %c0_i32, %c0_i32_0 : i32, i32
  }
  func.func @transform_5(%arg0: i32) -> (i32, i32) {
    %c0_i32 = arith.constant 0 : i32
    %c0_i32_0 = arith.constant 0 : i32
    return %arg0, %c0_i32 : i32, i32
  }
}

</mosaic_0001>

<bundles_post_ra>
// kernel: tpu_custom_call.1
= control target key start
LH: loop header
LB: loop body
LE: loop exit
PB: predicated region body
PF: predicated region fallthrough
CT: control target
= control target key end

     0   :  { %10 = vsyncpa [#allocation3], 0  ;;  %s4662_s0 = inlined_call_operand.hbm [shape: f32[8,768], index: 0, kind: input, shape index: {}]   ;;  %s4663_s1 = inlined_call_operand.hbm [shape: bf16[768,768], index: 1, kind: input, shape index: {}]   ;;  %s4664_s2 = inlined_call_operand.hbm [shape: bf16[768,256], index: 2, kind: input, shape index: {}]   ;;  %s4665_s3 = inlined_call_operand.hbm [shape: bf16[256,128], index: 3, kind: input, shape index: {}]   ;;  %s4666_s4 = inlined_call_operand.hbm [shape: f32[8,1024], index: 4, kind: input, shape index: {}]   ;;  %s4667_s5 = inlined_call_operand.hbm [shape: f32[8,128], index: 5, kind: output, shape index: {}]  }
   0x1   :  { %11 = vsyncpa [#allocation6], 0 }
   0x2   :  { %12 = vsyncpa [#allocation9], 0 }
   0x3   :  { %13 = vsyncpa [#allocation4], 0  ;;  %s4432_s18 = smov [#allocation5]  }
   0x4   :  { %s29_s19 = sshll.u32 %s4432_s18, 4  ;;  %s30_s19 = int_to_ptr.vmem [resolvable:$true] %s29_s19 }
   0x5   :  { %s4312_s20 = scalar_lea.vmem %s30_s19, 36864  ;;  %p4317_p1 = scmp.lt.s32.totalorder %s30_s19, %s30_s19 }
   0x6   :  { %p4313_p0 = scmp.ne.s32.totalorder %s30_s19, %s4312_s20  ;;  %p4318_p2 = scmp.lt.s32.totalorder %s4312_s20, %s4312_s20 }
   0x8   :  { %p4319_p3 = por %p4318_p2, %p4317_p1 }
   0xa   :  { %p4320_p4 = pnand %p4319_p3, %p4313_p0 }
   0xc   :  { %4323 = shalt.err (!%p4320_p4)
}
   0xd   :  { %s4433_s21 = smov 384   ;;  %s4434_s22 = smov 24  }
   0xe   :  { %35 = dma.hbm_to_vmem [thread:$0]  %s4663_s1, 36864, %s30_s19, [#allocation6], %s4433_s21, %s4433_s21, %s4434_s22  }
   0xf   :  { %s4435_s25 = smov [#allocation8]  }
  0x10   :  { %s53_s26 = sshll.u32 %s4435_s25, 4  ;;  %s54_s26 = int_to_ptr.vmem [resolvable:$true] %s53_s26 }
  0x11   :  { %s4332_s27 = scalar_lea.vmem %s54_s26, 2048  ;;  %p4337_p6 = scmp.lt.s32.totalorder %s54_s26, %s54_s26 }
  0x12   :  { %p4333_p5 = scmp.ne.s32.totalorder %s54_s26, %s4332_s27  ;;  %p4338_p7 = scmp.lt.s32.totalorder %s4332_s27, %s4332_s27 }
  0x14   :  { %p4339_p8 = por %p4338_p7, %p4337_p6 }
  0x16   :  { %p4340_p9 = pnand %p4339_p8, %p4333_p5 }
  0x18   :  { %4343 = shalt.err (!%p4340_p9)
}
  0x19   :  { %s4436_s28 = smov 64   ;;  %s4437_s29 = smov 4  }
  0x1a   :  { %59 = dma.hbm_to_vmem [thread:$0]  %s4665_s3, 2048, %s54_s26, [#allocation9], %s4436_s28, %s4436_s28, %s4437_s29  }
  0x1b   :  { %s4438_s7 = smov [#allocation2]   ;;  %s4439_s9 = smov [#allocation7]  }
  0x1c   :  { %s20_s8 = sshll.u32 %s4438_s7, 4  ;;  %s41_s1 = sshll.u32 %s4439_s9, 4  ;;  %s21_s8 = int_to_ptr.vmem [resolvable:$true] %s20_s8  ;;  %s42_s1 = int_to_ptr.vmem [resolvable:$true] %s41_s1 }
  0x1d   :  { %s4352_s10 = scalar_lea.vmem %s21_s8, 768  ;;  %p4357_p11 = scmp.lt.s32.totalorder %s21_s8, %s21_s8 }
  0x1e   :  { %p4353_p10 = scmp.ne.s32.totalorder %s21_s8, %s4352_s10  ;;  %p4358_p12 = scmp.lt.s32.totalorder %s4352_s10, %s4352_s10 }
  0x20   :  { %p4359_p13 = por %p4358_p12, %p4357_p11 }
  0x22   :  { %p4360_p0 = pnand %p4359_p13, %p4353_p10 }
  0x24   :  { %4363 = shalt.err (!%p4360_p0)
}
  0x25   :  { %23 = dma.hbm_to_vmem [thread:$0]  %s4662_s0, 768, %s21_s8, [#allocation3]  }
  0x26   :  { %s4372_s13 = scalar_lea.vmem %s42_s1, 12288  ;;  %p4377_p2 = scmp.lt.s32.totalorder %s42_s1, %s42_s1 }
  0x27   :  { %p4373_p1 = scmp.ne.s32.totalorder %s42_s1, %s4372_s13  ;;  %p4378_p3 = scmp.lt.s32.totalorder %s4372_s13, %s4372_s13 }
  0x29   :  { %p4379_p4 = por %p4378_p3, %p4377_p2 }
  0x2b   :  { %p4380_p5 = pnand %p4379_p4, %p4373_p1 }
  0x2d   :  { %4383 = shalt.err (!%p4380_p5)
}
  0x2e   :  { %s4440_s3 = smov 128   ;;  %s4441_s14 = smov 8  }
  0x2f   :  { %47 = dma.hbm_to_vmem [thread:$0]  %s4664_s2, 12288, %s42_s1, [#allocation6], %s4440_s3, %s4440_s3, %s4441_s14  }
  0x30   :  { %s4442_s17 = smov [#allocation10]  }
  0x31   :  { %s66_s18 = sshll.u32 %s4442_s17, 4  ;;  %s67_s18 = int_to_ptr.vmem [resolvable:$true] %s66_s18 }
  0x32   :  { %s4392_s19 = scalar_lea.vmem %s67_s18, 1024  ;;  %p4397_p7 = scmp.lt.s32.totalorder %s67_s18, %s67_s18 }
  0x33   :  { %p4393_p6 = scmp.ne.s32.totalorder %s67_s18, %s4392_s19  ;;  %p4398_p8 = scmp.lt.s32.totalorder %s4392_s19, %s4392_s19 }
  0x35   :  { %p4399_p9 = por %p4398_p8, %p4397_p7 }
  0x37   :  { %p4400_p10 = pnand %p4399_p9, %p4393_p6 }
  0x39   :  { %4403 = shalt.err (!%p4400_p10)
}
  0x3a   :  { %69 = dma.hbm_to_vmem [thread:$0]  %s4666_s4, 1024, %s67_s18, [#allocation9]  }
  0x3b   :  { %4424 = dma.done.wait [#allocation3], 768  }
  0x3c   :  { %4425 = vsyncadd [#allocation3], 4294966528 }
  0x3d   :  { %4426 = dma.done.wait [#allocation6], 49152  }
  0x3e   :  { %4427 = vsyncadd [#allocation6], 4294918144 }
  0x3f   :  { %4428 = dma.done.wait [#allocation9], 3072  }
  0x40   :  { %4429 = vsyncadd [#allocation9], 4294964224  ;;  %v3708_v0 = vld [vmem:[#allocation5 + $0x154] ss:$24 sps:$4 sm:$0xff]   ;;  %v3710_v1 = vld [vmem:[#allocation5 + $0x150] ss:$24 sps:$4 sm:$0xff]  }
  0x41   :  { %1858 = vmatprep.subr.bf16.mxu0 %v3708_v0  ;;  %v3711_v2 = vld [vmem:[#allocation5 + $0x454] ss:$24 sps:$4 sm:$0xff]   ;;  %v3713_v3 = vld [vmem:[#allocation5 + $0x450] ss:$24 sps:$4 sm:$0xff]   ;;  %v3714_v4 = vld [vmem:[#allocation5 + $0x124] ss:$24 sps:$4 sm:$0xff]  }
  0x42   :  { %1859 = vmatpush1.bf16.msra.mxu0 %v3710_v1  ;;  %v3716_v5 = vld [vmem:[#allocation5 + $0x120] ss:$24 sps:$4 sm:$0xff]   ;;  %1899 = vmatprep.subr.bf16.mxu1 %v3711_v2  ;;  %v3717_v6 = vld [vmem:[#allocation5 + $0x424] ss:$24 sps:$4 sm:$0xff]   ;;  %v3720_v8 = vld [vmem:[#allocation5 + $0xf4] ss:$24 sps:$4 sm:$0xff]  }
  0x43   :  { %1900 = vmatpush1.bf16.msra.mxu1 %v3713_v3  ;;  %1860 = vmatprep.subr.bf16.mxu0 %v3714_v4  ;;  %v3719_v7 = vld [vmem:[#allocation5 + $0x420] ss:$24 sps:$4 sm:$0xff]   ;;  %v3722_v9 = vld [vmem:[#allocation5 + $0xf0] ss:$24 sps:$4 sm:$0xff]   ;;  %v3723_v10 = vld [vmem:[#allocation5 + $0x3f4] ss:$24 sps:$4 sm:$0xff]  }
  0x44   :  { %1901 = vmatprep.subr.bf16.mxu1 %v3717_v6  ;;  %v3726_v11 = vld [vmem:[#allocation5 + $0xc4] ss:$24 sps:$4 sm:$0xff]   ;;  %v3725_v12 = vld [vmem:[#allocation5 + $0x3f0] ss:$24 sps:$4 sm:$0xff]   ;;  %v3728_v14 = vld [vmem:[#allocation5 + $0xc0] ss:$24 sps:$4 sm:$0xff]  }
  0x45   :  { %v3729_v13 = vld [vmem:[#allocation5 + $0x3c4] ss:$24 sps:$4 sm:$0xff]   ;;  %v3732_v15 = vld [vmem:[#allocation5 + $0x94] ss:$24 sps:$4 sm:$0xff]   ;;  %v3731_v16 = vld [vmem:[#allocation5 + $0x3c0] ss:$24 sps:$4 sm:$0xff]  }
  0x46   :  { %1861 = vmatpush1.bf16.msra.mxu0 %v3716_v5  ;;  %v3735_v17 = vld [vmem:[#allocation5 + $0x394] ss:$24 sps:$4 sm:$0xff]   ;;  %v3734_v18 = vld [vmem:[#allocation5 + $0x90] ss:$24 sps:$4 sm:$0xff]   ;;  %v3738_v19 = vld [vmem:[#allocation5 + $0x64] ss:$24 sps:$4 sm:$0xff]  }
  0x47   :  { %1862 = vmatprep.subr.bf16.mxu0 %v3720_v8  ;;  %1902 = vmatpush1.bf16.msra.mxu1 %v3719_v7  ;;  %v3737_v20 = vld [vmem:[#allocation5 + $0x390] ss:$24 sps:$4 sm:$0xff]   ;;  %v3741_v21 = vld [vmem:[#allocation5 + $0x364] ss:$24 sps:$4 sm:$0xff]   ;;  %v3740_v22 = vld [vmem:[#allocation5 + $0x60] ss:$24 sps:$4 sm:$0xff]  }
  0x48   :  { %1903 = vmatprep.subr.bf16.mxu1 %v3723_v10  ;;  %v3744_v23 = vld [vmem:[#allocation5 + $0x34] ss:$24 sps:$4 sm:$0xff]   ;;  %v3743_v24 = vld [vmem:[#allocation5 + $0x360] ss:$24 sps:$4 sm:$0xff]   ;;  %v3746_v26 = vld [vmem:[#allocation5 + $0x30] ss:$24 sps:$4 sm:$0xff]  }
  0x49   :  { %v3747_v25 = vld [vmem:[#allocation5 + $0x334] ss:$24 sps:$4 sm:$0xff]   ;;  %v3750_v27 = vld [vmem:[#allocation5 + $0x4] ss:$24 sps:$4 sm:$0xff]   ;;  %v3749_v28 = vld [vmem:[#allocation5 + $0x330] ss:$24 sps:$4 sm:$0xff]  }
  0x4a   :  { %1863 = vmatpush1.bf16.msra.mxu0 %v3722_v9  ;;  %v3753_v29 = vld [vmem:[#allocation5 + $0x304] ss:$24 sps:$4 sm:$0xff]   ;;  %v3752_v30 = vld [vmem:[#allocation5] ss:$24 sps:$4 sm:$0xff]   ;;  %v3756_v31 = vld [vmem:[#allocation5 + $0x2d4] ss:$24 sps:$4 sm:$0xff]  }
  0x4b   :  { %1864 = vmatprep.subr.bf16.mxu0 %v3726_v11  ;;  %1904 = vmatpush1.bf16.msra.mxu1 %v3725_v12  ;;  %v3755_v32 = vld [vmem:[#allocation5 + $0x300] ss:$24 sps:$4 sm:$0xff]   ;;  %v3759_v33 = vld [vmem:[#allocation5 + $0x5d4] ss:$24 sps:$4 sm:$0xff]   ;;  %v3758_v34 = vld [vmem:[#allocation5 + $0x2d0] ss:$24 sps:$4 sm:$0xff]  }
  0x4c   :  { %1905 = vmatprep.subr.bf16.mxu1 %v3729_v13  ;;  %v3762_v35 = vld [vmem:[#allocation5 + $0x2a4] ss:$24 sps:$4 sm:$0xff]   ;;  %v3761_v36 = vld [vmem:[#allocation5 + $0x5d0] ss:$24 sps:$4 sm:$0xff]   ;;  %v3764_v38 = vld [vmem:[#allocation5 + $0x2a0] ss:$24 sps:$4 sm:$0xff]  }
  0x4d   :  { %v3765_v37 = vld [vmem:[#allocation5 + $0x5a4] ss:$24 sps:$4 sm:$0xff]   ;;  %v3768_v39 = vld [vmem:[#allocation5 + $0x274] ss:$24 sps:$4 sm:$0xff]   ;;  %v3767_v40 = vld [vmem:[#allocation5 + $0x5a0] ss:$24 sps:$4 sm:$0xff]  }
  0x4e   :  { %1865 = vmatpush1.bf16.msra.mxu0 %v3728_v14  ;;  %v3771_v41 = vld [vmem:[#allocation5 + $0x574] ss:$24 sps:$4 sm:$0xff]   ;;  %v3770_v42 = vld [vmem:[#allocation5 + $0x270] ss:$24 sps:$4 sm:$0xff]   ;;  %v3774_v43 = vld [vmem:[#allocation5 + $0x244] ss:$24 sps:$4 sm:$0xff]  }
  0x4f   :  { %1866 = vmatprep.subr.bf16.mxu0 %v3732_v15  ;;  %1906 = vmatpush1.bf16.msra.mxu1 %v3731_v16  ;;  %v3773_v44 = vld [vmem:[#allocation5 + $0x570] ss:$24 sps:$4 sm:$0xff]   ;;  %v3777_v45 = vld [vmem:[#allocation5 + $0x544] ss:$24 sps:$4 sm:$0xff]   ;;  %v3776_v47 = vld [vmem:[#allocation5 + $0x240] ss:$24 sps:$4 sm:$0xff]  }
  0x50   :  { %1907 = vmatprep.subr.bf16.mxu1 %v3735_v17  ;;  %v95_v46 = vld [vmem:[#allocation2 + $0x8] sm:$0xff]  ;;  %v3780_v49 = vld [vmem:[#allocation5 + $0x214] ss:$24 sps:$4 sm:$0xff]   ;;  %v3782_v54 = vld [vmem:[#allocation5 + $0x210] ss:$24 sps:$4 sm:$0xff]   ;;  %s4443_s2 = smov [#allocation11]  }
  0x51   :  { %v4489_v48 = vpack.c.bf16 %v95_v46, %v95_v46  ;;  %v97_v50 = vld [vmem:[#allocation2 + $0x18] sm:$0xff]  ;;  %v3779_v51 = vld [vmem:[#allocation5 + $0x540] ss:$24 sps:$4 sm:$0xff]   ;;  %v3786_v55 = vld [vmem:[#allocation5 + $0x1e4] ss:$24 sps:$4 sm:$0xff]   ;;  %s3263_s4 = sshll.u32 %s4443_s2, 4  ;;  %s3264_s4 = int_to_ptr.vmem [resolvable:$true] %s3263_s4 }
  0x52   :  { %1867 = vmatpush1.bf16.msra.mxu0 %v3734_v18  ;;  %v4492_v52 = vpack.c.bf16 %v97_v50, %v97_v50  ;;  %v3783_v53 = vld [vmem:[#allocation5 + $0x514] ss:$24 sps:$4 sm:$0xff]   ;;  %v3785_v56 = vld [vmem:[#allocation5 + $0x510] ss:$24 sps:$4 sm:$0xff]   ;;  %v3789_v57 = vld [vmem:[#allocation5 + $0x4e4] ss:$24 sps:$4 sm:$0xff]   ;;  %p4409_p12 = scmp.lt.s32.totalorder %s3264_s4, %s3264_s4 }
  0x53   :  { %1868 = vmatprep.subr.bf16.mxu0 %v3738_v19  ;;  %1908 = vmatpush1.bf16.msra.mxu1 %v3737_v20  ;;  %v3788_v58 = vld [vmem:[#allocation5 + $0x1e0] ss:$24 sps:$4 sm:$0xff]   ;;  %v3792_v59 = vld [vmem:[#allocation5 + $0x1b4] ss:$24 sps:$4 sm:$0xff]   ;;  %v3794_v62 = vld [vmem:[#allocation5 + $0x1b0] ss:$24 sps:$4 sm:$0xff]  }
  0x54   :  { %1909 = vmatprep.subr.bf16.mxu1 %v3741_v21  ;;  %1890 = vmatprep.mubr.bf16.mxu0 %v4489_v48  ;;  %v3791_v60 = vld [vmem:[#allocation5 + $0x4e0] ss:$24 sps:$4 sm:$0xff]   ;;  %v3795_v61 = vld [vmem:[#allocation5 + $0x4b4] ss:$24 sps:$4 sm:$0xff]   ;;  %v3798_v63 = vld [vmem:[#allocation5 + $0x184] ss:$24 sps:$4 sm:$0xff]  }
  0x55   :  { %1931 = vmatprep.mubr.bf16.mxu1 %v4492_v52  ;;  %v3797_v0 = vld [vmem:[#allocation5 + $0x4b0] ss:$24 sps:$4 sm:$0xff]   ;;  %v3800_v1 = vld [vmem:[#allocation5 + $0x180] ss:$24 sps:$4 sm:$0xff]   ;;  %v3801_v2 = vld [vmem:[#allocation5 + $0x484] ss:$24 sps:$4 sm:$0xff]  }
  0x56   :  { %1869 = vmatpush1.bf16.msra.mxu0 %v3740_v22  ;;  %v3803_v3 = vld [vmem:[#allocation5 + $0x480] ss:$24 sps:$4 sm:$0xff]   ;;  %v94_v4 = vld [vmem:[#allocation2] sm:$0xff]  ;;  %v3812_v11 = vld [vmem:[#allocation5 + $0x724] ss:$24 sps:$4 sm:$0xff]   ;;  %s4404_s21 = scalar_lea.vmem %s3264_s4, 128 }
  0x57   :  { %1870 = vmatprep.subr.bf16.mxu0 %v3744_v23  ;;  %1910 = vmatpush1.bf16.msra.mxu1 %v3743_v24  ;;  %v3806_v5 = vld [vmem:[#allocation5 + $0x754] ss:$24 sps:$4 sm:$0xff]   ;;  %v96_v6 = vld [vmem:[#allocation2 + $0x10] sm:$0xff]  ;;  %v4495_v7 = vpack.c.bf16 %v94_v4, %v94_v4  ;;  %v3804_v9 = vld [vmem:[#allocation5 + $0x750] ss:$24 sps:$4 sm:$0xff]   ;;  %p4405_p11 = scmp.ne.s32.totalorder %s3264_s4, %s4404_s21  ;;  %p4410_p13 = scmp.lt.s32.totalorder %s4404_s21, %s4404_s21 }
  0x58   :  { %1911 = vmatprep.subr.bf16.mxu1 %v3747_v25  ;;  %v3809_v8 = vld [vmem:[#allocation5 + $0x15c] ss:$24 sps:$4 sm:$0xff]   ;;  %v4497_v10 = vpack.c.bf16 %v96_v6, %v96_v6  ;;  %v3807_v12 = vld [vmem:[#allocation5 + $0x158] ss:$24 sps:$4 sm:$0xff]   ;;  %v3815_v13 = vld [vmem:[#allocation5 + $0x12c] ss:$24 sps:$4 sm:$0xff]  }
  0x59   :  { %v3810_v14 = vld [vmem:[#allocation5 + $0x720] ss:$24 sps:$4 sm:$0xff]   ;;  %v3818_v15 = vld [vmem:[#allocation5 + $0x6f4] ss:$24 sps:$4 sm:$0xff]   ;;  %v3816_v18 = vld [vmem:[#allocation5 + $0x6f0] ss:$24 sps:$4 sm:$0xff]   ;;  %p4411_p0 = por %p4410_p13, %p4409_p12 }
  0x5a   :  { %1871 = vmatpush1.bf16.msra.mxu0 %v3746_v26  ;;  %v3813_v16 = vld [vmem:[#allocation5 + $0x128] ss:$24 sps:$4 sm:$0xff]   ;;  %v3821_v17 = vld [vmem:[#allocation5 + $0xfc] ss:$24 sps:$4 sm:$0xff]   ;;  %v3819_v20 = vld [vmem:[#allocation5 + $0xf8] ss:$24 sps:$4 sm:$0xff]  }
  0x5b   :  { %1872 = vmatprep.subr.bf16.mxu0 %v3750_v27  ;;  %1912 = vmatpush1.bf16.msra.mxu1 %v3749_v28  ;;  %v3824_v19 = vld [vmem:[#allocation5 + $0x6c4] ss:$24 sps:$4 sm:$0xff]   ;;  %v3822_v22 = vld [vmem:[#allocation5 + $0x6c0] ss:$24 sps:$4 sm:$0xff]   ;;  %v3830_v23 = vld [vmem:[#allocation5 + $0x694] ss:$24 sps:$4 sm:$0xff]   ;;  %p4412_p1 = pnand %p4411_p0, %p4405_p11 }
  0x5c   :  { %1913 = vmatprep.subr.bf16.mxu1 %v3753_v29  ;;  %v3827_v21 = vld [vmem:[#allocation5 + $0xcc] ss:$24 sps:$4 sm:$0xff]   ;;  %v3825_v24 = vld [vmem:[#allocation5 + $0xc8] ss:$24 sps:$4 sm:$0xff]   ;;  %v3833_v25 = vld [vmem:[#allocation5 + $0x9c] ss:$24 sps:$4 sm:$0xff]  }
  0x5d   :  { %v3828_v26 = vld [vmem:[#allocation5 + $0x690] ss:$24 sps:$4 sm:$0xff]   ;;  %v3836_v27 = vld [vmem:[#allocation5 + $0x664] ss:$24 sps:$4 sm:$0xff]   ;;  %v3866_v50 = vld [vmem:[#allocation5 + $0x874] ss:$24 sps:$4 sm:$0xff]  }
  0x5e   :  { %1873 = vmatpush1.bf16.msra.mxu0 %v3752_v30  ;;  %v3831_v28 = vld [vmem:[#allocation5 + $0x98] ss:$24 sps:$4 sm:$0xff]   ;;  %v3839_v29 = vld [vmem:[#allocation5 + $0x6c] ss:$24 sps:$4 sm:$0xff]   ;;  %v3885_v4 = vld [vmem:[#allocation5 + $0x1e8] ss:$24 sps:$4 sm:$0xff]  }
  0x5f   :  { %1874 = vmatprep.subr.bf16.mxu0 %v3756_v31  ;;  %1914 = vmatpush1.bf16.msra.mxu1 %v3755_v32  ;;  %v3834_v30 = vld [vmem:[#allocation5 + $0x660] ss:$24 sps:$4 sm:$0xff]   ;;  %v3842_v31 = vld [vmem:[#allocation5 + $0x634] ss:$24 sps:$4 sm:$0xff]   ;;  %v3888_v6 = vld [vmem:[#allocation5 + $0x7b0] ss:$24 sps:$4 sm:$0xff]  }
  0x60   :  { %1915 = vmatprep.subr.bf16.mxu1 %v3759_v33  ;;  %v3837_v32 = vld [vmem:[#allocation5 + $0x68] ss:$24 sps:$4 sm:$0xff]   ;;  %v3845_v33 = vld [vmem:[#allocation5 + $0x3c] ss:$24 sps:$4 sm:$0xff]   ;;  %v3855_v46 = vld [vmem:[#allocation5 + $0x2d8] ss:$24 sps:$4 sm:$0xff]  }
  0x62   :  { %1875 = vmatpush2.bf16.msra.mxu0 %v3758_v34  ;;  %v99_v34 = vld [vmem:[#allocation2 + $0x28] sm:$0xff] }
  0x63   :  { %1876 = vmatprep.subr.bf16.mxu0 %v3762_v35  ;;  %1916 = vmatpush2.bf16.msra.mxu1 %v3761_v36  ;;  %v3840_v35 = vld [vmem:[#allocation5 + $0x630] ss:$24 sps:$4 sm:$0xff]   ;;  %v4502_v36 = vpack.c.bf16 %v99_v34, %v99_v34 }
  0x64   :  { %1917 = vmatprep.subr.bf16.mxu1 %v3765_v37  ;;  %v3848_v37 = vld [vmem:[#allocation5 + $0x604] ss:$24 sps:$4 sm:$0xff]   ;;  %v3924_v34 = vld [vmem:[#allocation5 + $0x398] ss:$24 sps:$4 sm:$0xff]  }
  0x66   :  { %1877 = vmatpush2.bf16.msra.mxu0 %v3764_v38  ;;  %v3843_v38 = vld [vmem:[#allocation5 + $0x38] ss:$24 sps:$4 sm:$0xff]  }
  0x67   :  { %1878 = vmatprep.subr.bf16.mxu0 %v3768_v39  ;;  %1918 = vmatpush2.bf16.msra.mxu1 %v3767_v40  ;;  %v3851_v39 = vld [vmem:[#allocation5 + $0xc] ss:$24 sps:$4 sm:$0xff]   ;;  %v3846_v40 = vld [vmem:[#allocation5 + $0x600] ss:$24 sps:$4 sm:$0xff]  }
  0x68   :  { %1919 = vmatprep.subr.bf16.mxu1 %v3771_v41  ;;  %v3854_v41 = vld [vmem:[#allocation5 + $0x8d4] ss:$24 sps:$4 sm:$0xff]  }
  0x6a   :  { %1879 = vmatpush2.bf16.msra.mxu0 %v3770_v42  ;;  %v3849_v42 = vld [vmem:[#allocation5 + $0x8] ss:$24 sps:$4 sm:$0xff]  }
  0x6b   :  { %1880 = vmatprep.subr.bf16.mxu0 %v3774_v43  ;;  %1920 = vmatpush2.bf16.msra.mxu1 %v3773_v44  ;;  %v3857_v43 = vld [vmem:[#allocation5 + $0x2dc] ss:$24 sps:$4 sm:$0xff]   ;;  %v3852_v44 = vld [vmem:[#allocation5 + $0x8d0] ss:$24 sps:$4 sm:$0xff]  }
  0x6c   :  { %1921 = vmatprep.subr.bf16.mxu1 %v3777_v45  ;;  %v3860_v45 = vld [vmem:[#allocation5 + $0x8a4] ss:$24 sps:$4 sm:$0xff]  }
  0x6e   :  { %1881 = vmatpush2.bf16.msra.mxu0 %v3776_v47  ;;  %v3863_v47 = vld [vmem:[#allocation5 + $0x2ac] ss:$24 sps:$4 sm:$0xff]  }
  0x6f   :  { %1882 = vmatprep.subr.bf16.mxu0 %v3780_v49  ;;  %1922 = vmatpush2.bf16.msra.mxu1 %v3779_v51  ;;  %v3858_v49 = vld [vmem:[#allocation5 + $0x8a0] ss:$24 sps:$4 sm:$0xff]  }
  0x70   :  { %1923 = vmatprep.subr.bf16.mxu1 %v3783_v53  ;;  %v3861_v51 = vld [vmem:[#allocation5 + $0x2a8] ss:$24 sps:$4 sm:$0xff]   ;;  %v3869_v53 = vld [vmem:[#allocation5 + $0x27c] ss:$24 sps:$4 sm:$0xff]  }
  0x72   :  { %1883 = vmatpush2.bf16.msra.mxu0 %v3782_v54  ;;  %v3864_v54 = vld [vmem:[#allocation5 + $0x870] ss:$24 sps:$4 sm:$0xff]  }
  0x73   :  { %1884 = vmatprep.subr.bf16.mxu0 %v3786_v55  ;;  %1924 = vmatpush2.bf16.msra.mxu1 %v3785_v56  ;;  %v3872_v55 = vld [vmem:[#allocation5 + $0x844] ss:$24 sps:$4 sm:$0xff]   ;;  %v3867_v56 = vld [vmem:[#allocation5 + $0x278] ss:$24 sps:$4 sm:$0xff]  }
  0x74   :  { %1925 = vmatprep.subr.bf16.mxu1 %v3789_v57  ;;  %v3875_v57 = vld [vmem:[#allocation5 + $0x24c] ss:$24 sps:$4 sm:$0xff]  }
  0x76   :  { %1885 = vmatpush2.bf16.msra.mxu0 %v3788_v58  ;;  %v3870_v58 = vld [vmem:[#allocation5 + $0x840] ss:$24 sps:$4 sm:$0xff]  }
  0x77   :  { %1886 = vmatprep.subr.bf16.mxu0 %v3792_v59  ;;  %1926 = vmatpush2.bf16.msra.mxu1 %v3791_v60  ;;  %v3878_v59 = vld [vmem:[#allocation5 + $0x814] ss:$24 sps:$4 sm:$0xff]   ;;  %v3873_v60 = vld [vmem:[#allocation5 + $0x248] ss:$24 sps:$4 sm:$0xff]  }
  0x78   :  { %1927 = vmatprep.subr.bf16.mxu1 %v3795_v61  ;;  %v3881_v61 = vld [vmem:[#allocation5 + $0x21c] ss:$24 sps:$4 sm:$0xff]  }
  0x7a   :  { %1887 = vmatpush2.bf16.msra.mxu0 %v3794_v62  ;;  %v3876_v62 = vld [vmem:[#allocation5 + $0x810] ss:$24 sps:$4 sm:$0xff]  }
  0x7b   :  { %1888 = vmatprep.subr.bf16.mxu0 %v3798_v63  ;;  %1928 = vmatpush2.bf16.msra.mxu1 %v3797_v0  ;;  %v3884_v63 = vld [vmem:[#allocation5 + $0x7e4] ss:$24 sps:$4 sm:$0xff]   ;;  %v3879_v0 = vld [vmem:[#allocation5 + $0x218] ss:$24 sps:$4 sm:$0xff]  }
  0x7c   :  { %1929 = vmatprep.subr.bf16.mxu1 %v3801_v2  ;;  %v3882_v2 = vld [vmem:[#allocation5 + $0x7e0] ss:$24 sps:$4 sm:$0xff]  }
  0x7e   :  { %1889 = vmatpush2.bf16.msra.mxu0 %v3800_v1  ;;  %v3887_v1 = vld [vmem:[#allocation5 + $0x1ec] ss:$24 sps:$4 sm:$0xff]  }
  0x7f   :  { %1940 = vmatprep.subr.bf16.mxu0 %v3806_v5  ;;  %1930 = vmatpush2.bf16.msra.mxu1 %v3803_v3  ;;  %v3890_v3 = vld [vmem:[#allocation5 + $0x7b4] ss:$24 sps:$4 sm:$0xff]  }
  0x80   :  { %1981 = vmatprep.subr.bf16.mxu1 %v3809_v8  ;;  %v3893_v5 = vld [vmem:[#allocation5 + $0x1bc] ss:$24 sps:$4 sm:$0xff]  }
  0x81   :  { %1891 = vmatmul.mubr.bf16.vlgmr.msra.gmra.mxu0 %v4495_v7  ;;  %v3896_v8 = vld [vmem:[#allocation5 + $0x784] ss:$24 sps:$4 sm:$0xff]  }
  0x82   :  { %1941 = vmatpush1.bf16.msra.mxu0 %v3804_v9  ;;  %1932 = vmatmul.mubr.bf16.vlgmr.msra.gmra.mxu1 %v4497_v10  ;;  %v3891_v9 = vld [vmem:[#allocation5 + $0x1b8] ss:$24 sps:$4 sm:$0xff]  }
  0x83   :  { %1942 = vmatprep.subr.bf16.mxu0 %v3812_v11  ;;  %1982 = vmatpush1.bf16.msra.mxu1 %v3807_v12  ;;  %v3894_v11 = vld [vmem:[#allocation5 + $0x780] ss:$24 sps:$4 sm:$0xff]   ;;  %v3899_v12 = vld [vmem:[#allocation5 + $0x18c] ss:$24 sps:$4 sm:$0xff]  }
  0x84   :  { %2013 = vmatprep.mubr.bf16.mxu1 %v4489_v48  ;;  %1983 = vmatprep.subr.bf16.mxu1 %v3815_v13  ;;  %v98_v13 = vld [vmem:[#allocation2 + $0x20] sm:$0xff] }
  0x85   :  { %1972 = vmatprep.mubr.bf16.mxu0 %v4502_v36 }
  0x86   :  { %1943 = vmatpush1.bf16.msra.mxu0 %v3810_v14  ;;  %v3902_v14 = vld [vmem:[#allocation5 + $0x45c] ss:$24 sps:$4 sm:$0xff]  }
  0x87   :  { %1944 = vmatprep.subr.bf16.mxu0 %v3818_v15  ;;  %1984 = vmatpush1.bf16.msra.mxu1 %v3813_v16  ;;  %v3897_v15 = vld [vmem:[#allocation5 + $0x188] ss:$24 sps:$4 sm:$0xff]   ;;  %v4505_v16 = vpack.c.bf16 %v98_v13, %v98_v13 }
  0x88   :  { %1985 = vmatprep.subr.bf16.mxu1 %v3821_v17  ;;  %v3905_v17 = vld [vmem:[#allocation5 + $0x75c] ss:$24 sps:$4 sm:$0xff]   ;;  %v3981_v13 = vld [vmem:[#allocation5 + $0x7e8] ss:$24 sps:$4 sm:$0xff]  }
  0x8a   :  { %1945 = vmatpush1.bf16.msra.mxu0 %v3816_v18  ;;  %v3900_v18 = vld [vmem:[#allocation5 + $0x458] ss:$24 sps:$4 sm:$0xff]  }
  0x8b   :  { %1946 = vmatprep.subr.bf16.mxu0 %v3824_v19  ;;  %1986 = vmatpush1.bf16.msra.mxu1 %v3819_v20  ;;  %v3908_v19 = vld [vmem:[#allocation5 + $0x42c] ss:$24 sps:$4 sm:$0xff]   ;;  %v3903_v20 = vld [vmem:[#allocation5 + $0x758] ss:$24 sps:$4 sm:$0xff]  }
  0x8c   :  { %1987 = vmatprep.subr.bf16.mxu1 %v3827_v21  ;;  %v3911_v21 = vld [vmem:[#allocation5 + $0x72c] ss:$24 sps:$4 sm:$0xff]  }
  0x8e   :  { %1947 = vmatpush1.bf16.msra.mxu0 %v3822_v22  ;;  %v3906_v22 = vld [vmem:[#allocation5 + $0x428] ss:$24 sps:$4 sm:$0xff]  }
  0x8f   :  { %1948 = vmatprep.subr.bf16.mxu0 %v3830_v23  ;;  %1988 = vmatpush1.bf16.msra.mxu1 %v3825_v24  ;;  %v3914_v23 = vld [vmem:[#allocation5 + $0x3fc] ss:$24 sps:$4 sm:$0xff]   ;;  %v3909_v24 = vld [vmem:[#allocation5 + $0x728] ss:$24 sps:$4 sm:$0xff]  }
  0x90   :  { %1989 = vmatprep.subr.bf16.mxu1 %v3833_v25  ;;  %v3917_v25 = vld [vmem:[#allocation5 + $0x6fc] ss:$24 sps:$4 sm:$0xff]  }
  0x92   :  { %1949 = vmatpush1.bf16.msra.mxu0 %v3828_v26  ;;  %v3912_v26 = vld [vmem:[#allocation5 + $0x3f8] ss:$24 sps:$4 sm:$0xff]  }
  0x93   :  { %1950 = vmatprep.subr.bf16.mxu0 %v3836_v27  ;;  %1990 = vmatpush1.bf16.msra.mxu1 %v3831_v28  ;;  %v3920_v27 = vld [vmem:[#allocation5 + $0x3cc] ss:$24 sps:$4 sm:$0xff]   ;;  %v3915_v28 = vld [vmem:[#allocation5 + $0x6f8] ss:$24 sps:$4 sm:$0xff]  }
  0x94   :  { %1991 = vmatprep.subr.bf16.mxu1 %v3839_v29  ;;  %v3923_v29 = vld [vmem:[#allocation5 + $0x6cc] ss:$24 sps:$4 sm:$0xff]  }
  0x96   :  { %1951 = vmatpush1.bf16.msra.mxu0 %v3834_v30  ;;  %v3918_v30 = vld [vmem:[#allocation5 + $0x3c8] ss:$24 sps:$4 sm:$0xff]  }
  0x97   :  { %1952 = vmatprep.subr.bf16.mxu0 %v3842_v31  ;;  %1992 = vmatpush1.bf16.msra.mxu1 %v3837_v32  ;;  %v3926_v31 = vld [vmem:[#allocation5 + $0x39c] ss:$24 sps:$4 sm:$0xff]   ;;  %v3921_v32 = vld [vmem:[#allocation5 + $0x6c8] ss:$24 sps:$4 sm:$0xff]  }
  0x98   :  { %1993 = vmatprep.subr.bf16.mxu1 %v3845_v33  ;;  %v3929_v33 = vld [vmem:[#allocation5 + $0x69c] ss:$24 sps:$4 sm:$0xff]  }
  0x9a   :  { %1953 = vmatpush1.bf16.msra.mxu0 %v3840_v35  ;;  %v3932_v35 = vld [vmem:[#allocation5 + $0x36c] ss:$24 sps:$4 sm:$0xff]  }
  0x9b   :  { %1954 = vmatprep.subr.bf16.mxu0 %v3848_v37  ;;  %1994 = vmatpush1.bf16.msra.mxu1 %v3843_v38  ;;  %v3927_v37 = vld [vmem:[#allocation5 + $0x698] ss:$24 sps:$4 sm:$0xff]   ;;  %v3935_v38 = vld [vmem:[#allocation5 + $0x66c] ss:$24 sps:$4 sm:$0xff]  }
  0x9c   :  { %1995 = vmatprep.subr.bf16.mxu1 %v3851_v39  ;;  %v3930_v39 = vld [vmem:[#allocation5 + $0x368] ss:$24 sps:$4 sm:$0xff]  }
  0x9e   :  { %1955 = vmatpush1.bf16.msra.mxu0 %v3846_v40  ;;  %v3938_v40 = vld [vmem:[#allocation5 + $0x33c] ss:$24 sps:$4 sm:$0xff]  }
  0x9f   :  { %1956 = vmatprep.subr.bf16.mxu0 %v3854_v41  ;;  %1996 = vmatpush1.bf16.msra.mxu1 %v3849_v42  ;;  %v3933_v41 = vld [vmem:[#allocation5 + $0x668] ss:$24 sps:$4 sm:$0xff]   ;;  %v3941_v42 = vld [vmem:[#allocation5 + $0x63c] ss:$24 sps:$4 sm:$0xff]  }
  0xa0   :  { %1997 = vmatprep.subr.bf16.mxu1 %v3857_v43  ;;  %v3936_v43 = vld [vmem:[#allocation5 + $0x338] ss:$24 sps:$4 sm:$0xff]  }
  0xa2   :  { %1957 = vmatpush2.bf16.msra.mxu0 %v3852_v44  ;;  %v3944_v44 = vld [vmem:[#allocation5 + $0x30c] ss:$24 sps:$4 sm:$0xff]  }
  0xa3   :  { %1958 = vmatprep.subr.bf16.mxu0 %v3860_v45  ;;  %1998 = vmatpush2.bf16.msra.mxu1 %v3855_v46  ;;  %v3939_v45 = vld [vmem:[#allocation5 + $0x638] ss:$24 sps:$4 sm:$0xff]   ;;  %v3947_v46 = vld [vmem:[#allocation5 + $0x60c] ss:$24 sps:$4 sm:$0xff]  }
  0xa4   :  { %1999 = vmatprep.subr.bf16.mxu1 %v3863_v47  ;;  %v3942_v47 = vld [vmem:[#allocation5 + $0x308] ss:$24 sps:$4 sm:$0xff]  }
  0xa6   :  { %1959 = vmatpush2.bf16.msra.mxu0 %v3858_v49  ;;  %v3950_v49 = vld [vmem:[#allocation5 + $0x5dc] ss:$24 sps:$4 sm:$0xff]  }
  0xa7   :  { %1960 = vmatprep.subr.bf16.mxu0 %v3866_v50  ;;  %2000 = vmatpush2.bf16.msra.mxu1 %v3861_v51  ;;  %v3945_v50 = vld [vmem:[#allocation5 + $0x608] ss:$24 sps:$4 sm:$0xff]   ;;  %v3953_v51 = vld [vmem:[#allocation5 + $0x8dc] ss:$24 sps:$4 sm:$0xff]  }
  0xa8   :  { %2001 = vmatprep.subr.bf16.mxu1 %v3869_v53  ;;  %v3948_v53 = vld [vmem:[#allocation5 + $0x5d8] ss:$24 sps:$4 sm:$0xff]  }
  0xaa   :  { %1961 = vmatpush2.bf16.msra.mxu0 %v3864_v54  ;;  %v3956_v54 = vld [vmem:[#allocation5 + $0x5ac] ss:$24 sps:$4 sm:$0xff]  }
  0xab   :  { %1962 = vmatprep.subr.bf16.mxu0 %v3872_v55  ;;  %2002 = vmatpush2.bf16.msra.mxu1 %v3867_v56  ;;  %v3951_v55 = vld [vmem:[#allocation5 + $0x8d8] ss:$24 sps:$4 sm:$0xff]   ;;  %v3959_v56 = vld [vmem:[#allocation5 + $0x8ac] ss:$24 sps:$4 sm:$0xff]  }
  0xac   :  { %2003 = vmatprep.subr.bf16.mxu1 %v3875_v57  ;;  %v3954_v57 = vld [vmem:[#allocation5 + $0x5a8] ss:$24 sps:$4 sm:$0xff]  }
  0xae   :  { %1963 = vmatpush2.bf16.msra.mxu0 %v3870_v58  ;;  %v3962_v58 = vld [vmem:[#allocation5 + $0x57c] ss:$24 sps:$4 sm:$0xff]  }
  0xaf   :  { %1964 = vmatprep.subr.bf16.mxu0 %v3878_v59  ;;  %2004 = vmatpush2.bf16.msra.mxu1 %v3873_v60  ;;  %v3957_v59 = vld [vmem:[#allocation5 + $0x8a8] ss:$24 sps:$4 sm:$0xff]   ;;  %v3965_v60 = vld [vmem:[#allocation5 + $0x87c] ss:$24 sps:$4 sm:$0xff]  }
  0xb0   :  { %2005 = vmatprep.subr.bf16.mxu1 %v3881_v61  ;;  %v3960_v61 = vld [vmem:[#allocation5 + $0x578] ss:$24 sps:$4 sm:$0xff]  }
  0xb2   :  { %1965 = vmatpush2.bf16.msra.mxu0 %v3876_v62  ;;  %v3968_v62 = vld [vmem:[#allocation5 + $0x54c] ss:$24 sps:$4 sm:$0xff]  }
  0xb3   :  { %1966 = vmatprep.subr.bf16.mxu0 %v3884_v63  ;;  %2006 = vmatpush2.bf16.msra.mxu1 %v3879_v0  ;;  %v3963_v63 = vld [vmem:[#allocation5 + $0x878] ss:$24 sps:$4 sm:$0xff]   ;;  %v3971_v0 = vld [vmem:[#allocation5 + $0x84c] ss:$24 sps:$4 sm:$0xff]  }
  0xb4   :  { %2007 = vmatprep.subr.bf16.mxu1 %v3887_v1  ;;  %v3966_v1 = vld [vmem:[#allocation5 + $0x548] ss:$24 sps:$4 sm:$0xff]  }
  0xb6   :  { %1967 = vmatpush2.bf16.msra.mxu0 %v3882_v2  ;;  %v3974_v2 = vld [vmem:[#allocation5 + $0x51c] ss:$24 sps:$4 sm:$0xff]  }
  0xb7   :  { %1968 = vmatprep.subr.bf16.mxu0 %v3890_v3  ;;  %2008 = vmatpush2.bf16.msra.mxu1 %v3885_v4  ;;  %v3969_v3 = vld [vmem:[#allocation5 + $0x848] ss:$24 sps:$4 sm:$0xff]   ;;  %v3977_v4 = vld [vmem:[#allocation5 + $0x81c] ss:$24 sps:$4 sm:$0xff]  }
  0xb8   :  { %2009 = vmatprep.subr.bf16.mxu1 %v3893_v5  ;;  %v3972_v5 = vld [vmem:[#allocation5 + $0x518] ss:$24 sps:$4 sm:$0xff]  }
  0xba   :  { %1969 = vmatpush2.bf16.msra.mxu0 %v3888_v6  ;;  %v3980_v6 = vld [vmem:[#allocation5 + $0x4ec] ss:$24 sps:$4 sm:$0xff]  }
  0xbb   :  { %1970 = vmatprep.subr.bf16.mxu0 %v3896_v8  ;;  %2010 = vmatpush2.bf16.msra.mxu1 %v3891_v9  ;;  %v3975_v8 = vld [vmem:[#allocation5 + $0x818] ss:$24 sps:$4 sm:$0xff]   ;;  %v3983_v9 = vld [vmem:[#allocation5 + $0x7ec] ss:$24 sps:$4 sm:$0xff]  }
  0xbc   :  { %2011 = vmatprep.subr.bf16.mxu1 %v3899_v12  ;;  %v3986_v12 = vld [vmem:[#allocation5 + $0x4bc] ss:$24 sps:$4 sm:$0xff]  }
  0xbe   :  { %1971 = vmatpush2.bf16.msra.mxu0 %v3894_v11  ;;  %v3978_v11 = vld [vmem:[#allocation5 + $0x4e8] ss:$24 sps:$4 sm:$0xff]  }
  0xbf   :  { %2022 = vmatprep.subr.bf16.mxu0 %v3902_v14  ;;  %2012 = vmatpush2.bf16.msra.mxu1 %v3897_v15  ;;  %v3989_v14 = vld [vmem:[#allocation5 + $0x7bc] ss:$24 sps:$4 sm:$0xff]   ;;  %v3984_v15 = vld [vmem:[#allocation5 + $0x4b8] ss:$24 sps:$4 sm:$0xff]  }
  0xc0   :  { %2063 = vmatprep.subr.bf16.mxu1 %v3905_v17  ;;  %v3992_v17 = vld [vmem:[#allocation5 + $0x48c] ss:$24 sps:$4 sm:$0xff]  }
  0xc1   :  { %1973 = vmatmul.mubr.bf16.vlgmr.msra.gmra.mxu0 %v4505_v16 }
  0xc2   :  { %2023 = vmatpush1.bf16.msra.mxu0 %v3900_v18  ;;  %2054 = vmatprep.mubr.bf16.mxu0 %v4492_v52  ;;  %v3987_v18 = vld [vmem:[#allocation5 + $0x7b8] ss:$24 sps:$4 sm:$0xff]  }
  0xc3   :  { %2014 = vmatmul.mubr.bf16.vlgmr.msra.gmra.mxu1 %v4495_v7  ;;  %2024 = vmatprep.subr.bf16.mxu0 %v3908_v19  ;;  %v3995_v19 = vld [vmem:[#allocation5 + $0x78c] ss:$24 sps:$4 sm:$0xff]  }
  0xc4   :  { %2064 = vmatpush1.bf16.msra.mxu1 %v3903_v20  ;;  %2095 = vmatprep.mubr.bf16.mxu1 %v4502_v36  ;;  %v3990_v20 = vld [vmem:[#allocation5 + $0x488] ss:$24 sps:$4 sm:$0xff]  }
  0xc5   :  { %2065 = vmatprep.subr.bf16.mxu1 %v3911_v21  ;;  %v3998_v21 = vld [vmem:[#allocation5 + $0x164] ss:$24 sps:$4 sm:$0xff]  }
  0xc6   :  { %2025 = vmatpush1.bf16.msra.mxu0 %v3906_v22  ;;  %v3993_v22 = vld [vmem:[#allocation5 + $0x788] ss:$24 sps:$4 sm:$0xff]  }
  0xc7   :  { %2026 = vmatprep.subr.bf16.mxu0 %v3914_v23  ;;  %v4001_v23 = vld [vmem:[#allocation5 + $0x464] ss:$24 sps:$4 sm:$0xff]  }
  0xc8   :  { %2066 = vmatpush1.bf16.msra.mxu1 %v3909_v24  ;;  %v3996_v24 = vld [vmem:[#allocation5 + $0x160] ss:$24 sps:$4 sm:$0xff]  }
  0xc9   :  { %2067 = vmatprep.subr.bf16.mxu1 %v3917_v25  ;;  %v3999_v25 = vld [vmem:[#allocation5 + $0x460] ss:$24 sps:$4 sm:$0xff]  }
  0xca   :  { %2027 = vmatpush1.bf16.msra.mxu0 %v3912_v26  ;;  %v4004_v26 = vld [vmem:[#allocation5 + $0x134] ss:$24 sps:$4 sm:$0xff]  }
  0xcb   :  { %2028 = vmatprep.subr.bf16.mxu0 %v3920_v27  ;;  %v4002_v27 = vld [vmem:[#allocation5 + $0x130] ss:$24 sps:$4 sm:$0xff]  }
  0xcc   :  { %2068 = vmatpush1.bf16.msra.mxu1 %v3915_v28  ;;  %v4007_v28 = vld [vmem:[#allocation5 + $0x434] ss:$24 sps:$4 sm:$0xff]  }
  0xcd   :  { %2069 = vmatprep.subr.bf16.mxu1 %v3923_v29  ;;  %v4010_v29 = vld [vmem:[#allocation5 + $0x104] ss:$24 sps:$4 sm:$0xff]  }
  0xce   :  { %2029 = vmatpush1.bf16.msra.mxu0 %v3918_v30  ;;  %v4005_v30 = vld [vmem:[#allocation5 + $0x430] ss:$24 sps:$4 sm:$0xff]  }
  0xcf   :  { %2030 = vmatprep.subr.bf16.mxu0 %v3926_v31  ;;  %v4013_v31 = vld [vmem:[#allocation5 + $0x404] ss:$24 sps:$4 sm:$0xff]  }
  0xd0   :  { %2070 = vmatpush1.bf16.msra.mxu1 %v3921_v32  ;;  %v4008_v32 = vld [vmem:[#allocation5 + $0x100] ss:$24 sps:$4 sm:$0xff]  }
  0xd1   :  { %2071 = vmatprep.subr.bf16.mxu1 %v3929_v33  ;;  %v4011_v33 = vld [vmem:[#allocation5 + $0x400] ss:$24 sps:$4 sm:$0xff]  }
  0xd2   :  { %2031 = vmatpush1.bf16.msra.mxu0 %v3924_v34  ;;  %v4016_v34 = vld [vmem:[#allocation5 + $0xd4] ss:$24 sps:$4 sm:$0xff]  }
  0xd3   :  { %2032 = vmatprep.subr.bf16.mxu0 %v3932_v35  ;;  %v4019_v35 = vld [vmem:[#allocation5 + $0x3d4] ss:$24 sps:$4 sm:$0xff]  }
  0xd4   :  { %2072 = vmatpush1.bf16.msra.mxu1 %v3927_v37  ;;  %v4014_v37 = vld [vmem:[#allocation5 + $0xd0] ss:$24 sps:$4 sm:$0xff]  }
  0xd5   :  { %2073 = vmatprep.subr.bf16.mxu1 %v3935_v38  ;;  %v4022_v38 = vld [vmem:[#allocation5 + $0xa4] ss:$24 sps:$4 sm:$0xff]  }
  0xd6   :  { %2033 = vmatpush1.bf16.msra.mxu0 %v3930_v39  ;;  %v4025_v39 = vld [vmem:[#allocation5 + $0x3a4] ss:$24 sps:$4 sm:$0xff]  }
  0xd7   :  { %2034 = vmatprep.subr.bf16.mxu0 %v3938_v40  ;;  %v4020_v40 = vld [vmem:[#allocation5 + $0xa0] ss:$24 sps:$4 sm:$0xff]  }
  0xd8   :  { %2074 = vmatpush1.bf16.msra.mxu1 %v3933_v41  ;;  %v4028_v41 = vld [vmem:[#allocation5 + $0x74] ss:$24 sps:$4 sm:$0xff]  }
  0xd9   :  { %2075 = vmatprep.subr.bf16.mxu1 %v3941_v42  ;;  %v4031_v42 = vld [vmem:[#allocation5 + $0x374] ss:$24 sps:$4 sm:$0xff]  }
  0xda   :  { %2035 = vmatpush1.bf16.msra.mxu0 %v3936_v43  ;;  %v4026_v43 = vld [vmem:[#allocation5 + $0x70] ss:$24 sps:$4 sm:$0xff]  }
  0xdb   :  { %2036 = vmatprep.subr.bf16.mxu0 %v3944_v44  ;;  %v4034_v44 = vld [vmem:[#allocation5 + $0x44] ss:$24 sps:$4 sm:$0xff]  }
  0xdc   :  { %2076 = vmatpush1.bf16.msra.mxu1 %v3939_v45  ;;  %v4029_v45 = vld [vmem:[#allocation5 + $0x370] ss:$24 sps:$4 sm:$0xff]  }
  0xdd   :  { %2077 = vmatprep.subr.bf16.mxu1 %v3947_v46  ;;  %v4037_v46 = vld [vmem:[#allocation5 + $0x344] ss:$24 sps:$4 sm:$0xff]  }
  0xde   :  { %2037 = vmatpush1.bf16.msra.mxu0 %v3942_v47  ;;  %v4032_v47 = vld [vmem:[#allocation5 + $0x40] ss:$24 sps:$4 sm:$0xff]  }
  0xdf   :  { %2038 = vmatprep.subr.bf16.mxu0 %v3950_v49  ;;  %v4040_v49 = vld [vmem:[#allocation5 + $0x14] ss:$24 sps:$4 sm:$0xff]  }
  0xe0   :  { %2078 = vmatpush1.bf16.msra.mxu1 %v3945_v50  ;;  %v4035_v50 = vld [vmem:[#allocation5 + $0x340] ss:$24 sps:$4 sm:$0xff]  }
  0xe1   :  { %2079 = vmatprep.subr.bf16.mxu1 %v3953_v51  ;;  %v4043_v51 = vld [vmem:[#allocation5 + $0x314] ss:$24 sps:$4 sm:$0xff]  }
  0xe2   :  { %2039 = vmatpush2.bf16.msra.mxu0 %v3948_v53  ;;  %v4038_v53 = vld [vmem:[#allocation5 + $0x10] ss:$24 sps:$4 sm:$0xff]  }
  0xe3   :  { %2040 = vmatprep.subr.bf16.mxu0 %v3956_v54  ;;  %v4046_v54 = vld [vmem:[#allocation5 + $0x2e4] ss:$24 sps:$4 sm:$0xff]  }
  0xe4   :  { %2080 = vmatpush2.bf16.msra.mxu1 %v3951_v55  ;;  %v4041_v55 = vld [vmem:[#allocation5 + $0x310] ss:$24 sps:$4 sm:$0xff]  }
  0xe5   :  { %2081 = vmatprep.subr.bf16.mxu1 %v3959_v56  ;;  %v4049_v56 = vld [vmem:[#allocation5 + $0x5e4] ss:$24 sps:$4 sm:$0xff]  }
  0xe6   :  { %2041 = vmatpush2.bf16.msra.mxu0 %v3954_v57  ;;  %v4044_v57 = vld [vmem:[#allocation5 + $0x2e0] ss:$24 sps:$4 sm:$0xff]  }
  0xe7   :  { %2042 = vmatprep.subr.bf16.mxu0 %v3962_v58  ;;  %v4052_v58 = vld [vmem:[#allocation5 + $0x2b4] ss:$24 sps:$4 sm:$0xff]  }
  0xe8   :  { %2082 = vmatpush2.bf16.msra.mxu1 %v3957_v59  ;;  %v4047_v59 = vld [vmem:[#allocation5 + $0x5e0] ss:$24 sps:$4 sm:$0xff]  }
  0xe9   :  { %2083 = vmatprep.subr.bf16.mxu1 %v3965_v60  ;;  %v4055_v60 = vld [vmem:[#allocation5 + $0x5b4] ss:$24 sps:$4 sm:$0xff]  }
  0xea   :  { %2043 = vmatpush2.bf16.msra.mxu0 %v3960_v61  ;;  %v4050_v61 = vld [vmem:[#allocation5 + $0x2b0] ss:$24 sps:$4 sm:$0xff]  }
  0xeb   :  { %2044 = vmatprep.subr.bf16.mxu0 %v3968_v62  ;;  %v4058_v62 = vld [vmem:[#allocation5 + $0x284] ss:$24 sps:$4 sm:$0xff]  }
  0xec   :  { %2084 = vmatpush2.bf16.msra.mxu1 %v3963_v63  ;;  %v4053_v63 = vld [vmem:[#allocation5 + $0x5b0] ss:$24 sps:$4 sm:$0xff]  }
  0xed   :  { %2085 = vmatprep.subr.bf16.mxu1 %v3971_v0  ;;  %v4061_v0 = vld [vmem:[#allocation5 + $0x584] ss:$24 sps:$4 sm:$0xff]  }
  0xee   :  { %2045 = vmatpush2.bf16.msra.mxu0 %v3966_v1  ;;  %v4056_v1 = vld [vmem:[#allocation5 + $0x280] ss:$24 sps:$4 sm:$0xff]  }
  0xef   :  { %2046 = vmatprep.subr.bf16.mxu0 %v3974_v2  ;;  %v4064_v2 = vld [vmem:[#allocation5 + $0x254] ss:$24 sps:$4 sm:$0xff]  }
  0xf0   :  { %2086 = vmatpush2.bf16.msra.mxu1 %v3969_v3  ;;  %v4059_v3 = vld [vmem:[#allocation5 + $0x580] ss:$24 sps:$4 sm:$0xff]  }
  0xf1   :  { %2087 = vmatprep.subr.bf16.mxu1 %v3977_v4  ;;  %v4067_v4 = vld [vmem:[#allocation5 + $0x554] ss:$24 sps:$4 sm:$0xff]  }
  0xf2   :  { %2047 = vmatpush2.bf16.msra.mxu0 %v3972_v5  ;;  %v4062_v5 = vld [vmem:[#allocation5 + $0x250] ss:$24 sps:$4 sm:$0xff]  }
  0xf3   :  { %2048 = vmatprep.subr.bf16.mxu0 %v3980_v6  ;;  %v4070_v6 = vld [vmem:[#allocation5 + $0x224] ss:$24 sps:$4 sm:$0xff]  }
  0xf4   :  { %2088 = vmatpush2.bf16.msra.mxu1 %v3975_v8  ;;  %v4065_v8 = vld [vmem:[#allocation5 + $0x550] ss:$24 sps:$4 sm:$0xff]  }
  0xf5   :  { %2089 = vmatprep.subr.bf16.mxu1 %v3983_v9  ;;  %v4073_v9 = vld [vmem:[#allocation5 + $0x524] ss:$24 sps:$4 sm:$0xff]  }
  0xf6   :  { %2049 = vmatpush2.bf16.msra.mxu0 %v3978_v11  ;;  %v4068_v11 = vld [vmem:[#allocation5 + $0x220] ss:$24 sps:$4 sm:$0xff]  }
  0xf7   :  { %2050 = vmatprep.subr.bf16.mxu0 %v3986_v12  ;;  %v4076_v12 = vld [vmem:[#allocation5 + $0x1f4] ss:$24 sps:$4 sm:$0xff]  }
  0xf8   :  { %2090 = vmatpush2.bf16.msra.mxu1 %v3981_v13  ;;  %v4071_v13 = vld [vmem:[#allocation5 + $0x520] ss:$24 sps:$4 sm:$0xff]  }
  0xf9   :  { %2091 = vmatprep.subr.bf16.mxu1 %v3989_v14  ;;  %v4079_v14 = vld [vmem:[#allocation5 + $0x4f4] ss:$24 sps:$4 sm:$0xff]  }
  0xfa   :  { %2051 = vmatpush2.bf16.msra.mxu0 %v3984_v15  ;;  %v4074_v15 = vld [vmem:[#allocation5 + $0x1f0] ss:$24 sps:$4 sm:$0xff]  }
  0xfb   :  { %2052 = vmatprep.subr.bf16.mxu0 %v3992_v17  ;;  %v394_v17 = vlaneseq }
  0xfc   :  { %2092 = vmatpush2.bf16.msra.mxu1 %v3987_v18  ;;  %v4082_v18 = vld [vmem:[#allocation5 + $0x1c4] ss:$24 sps:$4 sm:$0xff]  }
  0xfd   :  { %2093 = vmatprep.subr.bf16.mxu1 %v3995_v19  ;;  %v4077_v19 = vld [vmem:[#allocation5 + $0x4f0] ss:$24 sps:$4 sm:$0xff]  }
  0xfe   :  { %2053 = vmatpush2.bf16.msra.mxu0 %v3990_v20  ;;  %v4085_v20 = vld [vmem:[#allocation5 + $0x4c4] ss:$24 sps:$4 sm:$0xff]  }
  0xff   :  { %2104 = vmatprep.subr.bf16.mxu0 %v3998_v21  ;;  %v4080_v21 = vld [vmem:[#allocation5 + $0x1c0] ss:$24 sps:$4 sm:$0xff]  }
 0x100   :  { %2094 = vmatpush2.bf16.msra.mxu1 %v3993_v22  ;;  %v4515_v22 = vshrl.u32 %v394_v17, 7 }
 0x101   :  { %2055 = vmatmul.mubr.bf16.vlgmr.msra.gmra.mxu0 %v4497_v10  ;;  %2145 = vmatprep.subr.bf16.mxu1 %v4001_v23  ;;  %v4088_v23 = vld [vmem:[#allocation5 + $0x194] ss:$24 sps:$4 sm:$0xff]  }
 0x102   :  { %2105 = vmatpush1.bf16.msra.mxu0 %v3996_v24  ;;  %2136 = vmatprep.mubr.bf16.mxu0 %v4489_v48  ;;  %v4017_v48 = vld [vmem:[#allocation5 + $0x3d0] ss:$24 sps:$4 sm:$0xff]   ;;  %v4083_v24 = vld [vmem:[#allocation5 + $0x4c0] ss:$24 sps:$4 sm:$0xff]  }
 0x103   :  { %2096 = vmatmul.mubr.bf16.vlgmr.msra.gmra.mxu1 %v4505_v16  ;;  %2106 = vmatprep.subr.bf16.mxu0 %v4004_v26  ;;  %v4086_v26 = vld [vmem:[#allocation5 + $0x190] ss:$24 sps:$4 sm:$0xff]  }
 0x104   :  { %2146 = vmatpush1.bf16.msra.mxu1 %v3999_v25  ;;  %2177 = vmatprep.mubr.bf16.mxu1 %v4492_v52  ;;  %v4023_v52 = vld [vmem:[#allocation5 + $0x3a0] ss:$24 sps:$4 sm:$0xff]   ;;  %v4091_v25 = vld [vmem:[#allocation5 + $0x494] ss:$24 sps:$4 sm:$0xff]  }
 0x105   :  { %2147 = vmatprep.subr.bf16.mxu1 %v4007_v28  ;;  %v4520_v28 = vld [vmem:[#allocation10] sm:$0xff] }
 0x106   :  { %2107 = vmatpush1.bf16.msra.mxu0 %v4002_v27  ;;  %v4518_v27 = vsub.s32 0, %v4515_v22 }
 0x107   :  { %2108 = vmatprep.subr.bf16.mxu0 %v4010_v29  ;;  %v4094_v29 = vld [vmem:[#allocation5 + $0x764] ss:$24 sps:$4 sm:$0xff]  }
 0x108   :  { %2148 = vmatpush1.bf16.msra.mxu1 %v4005_v30  ;;  %v4089_v30 = vld [vmem:[#allocation5 + $0x490] ss:$24 sps:$4 sm:$0xff]  }
 0x109   :  { %2149 = vmatprep.subr.bf16.mxu1 %v4013_v31  ;;  %v4522_v31 = vld [vmem:[#allocation10 + $0x8] sm:$0xff] }
 0x10a   :  { %2109 = vmatpush1.bf16.msra.mxu0 %v4008_v32  ;;  %v397_v32 = vrot.slane %v4520_v28, %v4518_v27 }
 0x10b   :  { %2110 = vmatprep.subr.bf16.mxu0 %v4016_v34  ;;  %v4097_v34 = vld [vmem:[#allocation5 + $0x734] ss:$24 sps:$4 sm:$0xff]  }
 0x10c   :  { %2150 = vmatpush1.bf16.msra.mxu1 %v4011_v33  ;;  %v4092_v33 = vld [vmem:[#allocation5 + $0x760] ss:$24 sps:$4 sm:$0xff]  }
 0x10d   :  { %2151 = vmatprep.subr.bf16.mxu1 %v4019_v35  ;;  %v401_v35 = vrot.slane %v4522_v31, %v4518_v27 }
 0x10e   :  { %2111 = vmatpush1.bf16.msra.mxu0 %v4014_v37 }
 0x10f   :  { %2112 = vmatprep.subr.bf16.mxu0 %v4022_v38 }
 0x110   :  { %2152 = vmatpush1.bf16.msra.mxu1 %v4017_v48  ;;  %v4095_v48 = vld [vmem:[#allocation5 + $0x730] ss:$24 sps:$4 sm:$0xff]  }
 0x111   :  { %2153 = vmatprep.subr.bf16.mxu1 %v4025_v39 }
 0x112   :  { %2113 = vmatpush1.bf16.msra.mxu0 %v4020_v40 }
 0x113   :  { %2114 = vmatprep.subr.bf16.mxu0 %v4028_v41  ;;  %v4100_v41 = vld [vmem:[#allocation5 + $0x704] ss:$24 sps:$4 sm:$0xff]  }
 0x114   :  { %2154 = vmatpush1.bf16.msra.mxu1 %v4023_v52 }
 0x115   :  { %2155 = vmatprep.subr.bf16.mxu1 %v4031_v42 }
 0x116   :  { %2115 = vmatpush1.bf16.msra.mxu0 %v4026_v43 }
 0x117   :  { %2116 = vmatprep.subr.bf16.mxu0 %v4034_v44 }
 0x118   :  { %2156 = vmatpush1.bf16.msra.mxu1 %v4029_v45 }
 0x119   :  { %2157 = vmatprep.subr.bf16.mxu1 %v4037_v46 }
 0x11a   :  { %2117 = vmatpush1.bf16.msra.mxu0 %v4032_v47  ;;  %v4103_v47 = vld [vmem:[#allocation5 + $0x6d4] ss:$24 sps:$4 sm:$0xff]  }
 0x11b   :  { %2118 = vmatprep.subr.bf16.mxu0 %v4040_v49 }
 0x11c   :  { %2158 = vmatpush1.bf16.msra.mxu1 %v4035_v50  ;;  %v4101_v50 = vld [vmem:[#allocation5 + $0x6d0] ss:$24 sps:$4 sm:$0xff]  }
 0x11d   :  { %2159 = vmatprep.subr.bf16.mxu1 %v4043_v51  ;;  %v4104_v51 = vld [vmem:[#allocation5 + $0x6a0] ss:$24 sps:$4 sm:$0xff]  }
 0x11e   :  { %2119 = vmatpush1.bf16.msra.mxu0 %v4038_v53  ;;  %v4109_v53 = vld [vmem:[#allocation5 + $0x674] ss:$24 sps:$4 sm:$0xff]  }
 0x11f   :  { %2120 = vmatprep.subr.bf16.mxu0 %v4046_v54  ;;  %v4107_v54 = vld [vmem:[#allocation5 + $0x670] ss:$24 sps:$4 sm:$0xff]  }
 0x120   :  { %2160 = vmatpush1.bf16.msra.mxu1 %v4041_v55  ;;  %v4112_v55 = vld [vmem:[#allocation5 + $0x644] ss:$24 sps:$4 sm:$0xff]  }
 0x121   :  { %2161 = vmatprep.subr.bf16.mxu1 %v4049_v56  ;;  %v4110_v56 = vld [vmem:[#allocation5 + $0x640] ss:$24 sps:$4 sm:$0xff]  }
 0x122   :  { %2121 = vmatpush2.bf16.msra.mxu0 %v4044_v57  ;;  %v4115_v57 = vld [vmem:[#allocation5 + $0x614] ss:$24 sps:$4 sm:$0xff]  }
 0x123   :  { %2122 = vmatprep.subr.bf16.mxu0 %v4052_v58  ;;  %v4113_v58 = vld [vmem:[#allocation5 + $0x610] ss:$24 sps:$4 sm:$0xff]  }
 0x124   :  { %2162 = vmatpush2.bf16.msra.mxu1 %v4047_v59  ;;  %v4118_v59 = vld [vmem:[#allocation5 + $0x8e4] ss:$24 sps:$4 sm:$0xff]  }
 0x125   :  { %2163 = vmatprep.subr.bf16.mxu1 %v4055_v60  ;;  %v4116_v60 = vld [vmem:[#allocation5 + $0x8e0] ss:$24 sps:$4 sm:$0xff]  }
 0x126   :  { %2123 = vmatpush2.bf16.msra.mxu0 %v4050_v61  ;;  %v4121_v61 = vld [vmem:[#allocation5 + $0x8b4] ss:$24 sps:$4 sm:$0xff]  }
 0x127   :  { %2124 = vmatprep.subr.bf16.mxu0 %v4058_v62  ;;  %v4119_v62 = vld [vmem:[#allocation5 + $0x8b0] ss:$24 sps:$4 sm:$0xff]  }
 0x128   :  { %2164 = vmatpush2.bf16.msra.mxu1 %v4053_v63  ;;  %v4124_v63 = vld [vmem:[#allocation5 + $0x884] ss:$24 sps:$4 sm:$0xff]  }
 0x129   :  { %2165 = vmatprep.subr.bf16.mxu1 %v4061_v0  ;;  %v4122_v0 = vld [vmem:[#allocation5 + $0x880] ss:$24 sps:$4 sm:$0xff]  }
 0x12a   :  { %2125 = vmatpush2.bf16.msra.mxu0 %v4056_v1  ;;  %v4127_v1 = vld [vmem:[#allocation5 + $0x854] ss:$24 sps:$4 sm:$0xff]  }
 0x12b   :  { %2126 = vmatprep.subr.bf16.mxu0 %v4064_v2  ;;  %v4125_v2 = vld [vmem:[#allocation5 + $0x850] ss:$24 sps:$4 sm:$0xff]  }
 0x12c   :  { %2166 = vmatpush2.bf16.msra.mxu1 %v4059_v3  ;;  %v4130_v3 = vld [vmem:[#allocation5 + $0x824] ss:$24 sps:$4 sm:$0xff]  }
 0x12d   :  { %2167 = vmatprep.subr.bf16.mxu1 %v4067_v4  ;;  %v4128_v4 = vld [vmem:[#allocation5 + $0x820] ss:$24 sps:$4 sm:$0xff]  }
 0x12e   :  { %2127 = vmatpush2.bf16.msra.mxu0 %v4062_v5  ;;  %v4133_v5 = vld [vmem:[#allocation5 + $0x7f4] ss:$24 sps:$4 sm:$0xff]  }
 0x12f   :  { %2128 = vmatprep.subr.bf16.mxu0 %v4070_v6  ;;  %v4131_v6 = vld [vmem:[#allocation5 + $0x7f0] ss:$24 sps:$4 sm:$0xff]  }
 0x130   :  { %2168 = vmatpush2.bf16.msra.mxu1 %v4065_v8  ;;  %v4136_v8 = vld [vmem:[#allocation5 + $0x7c4] ss:$24 sps:$4 sm:$0xff]  }
 0x131   :  { %2169 = vmatprep.subr.bf16.mxu1 %v4073_v9  ;;  %v4134_v9 = vld [vmem:[#allocation5 + $0x7c0] ss:$24 sps:$4 sm:$0xff]  }
 0x132   :  { %2129 = vmatpush2.bf16.msra.mxu0 %v4068_v11  ;;  %v4139_v11 = vld [vmem:[#allocation5 + $0x794] ss:$24 sps:$4 sm:$0xff]  }
 0x133   :  { %2130 = vmatprep.subr.bf16.mxu0 %v4076_v12  ;;  %v4137_v12 = vld [vmem:[#allocation5 + $0x790] ss:$24 sps:$4 sm:$0xff]  }
 0x134   :  { %2170 = vmatpush2.bf16.msra.mxu1 %v4071_v13 }
 0x135   :  { %2171 = vmatprep.subr.bf16.mxu1 %v4079_v14 }
 0x136   :  { %2131 = vmatpush2.bf16.msra.mxu0 %v4074_v15 }
 0x137   :  { %2132 = vmatprep.subr.bf16.mxu0 %v4082_v18 }
 0x138   :  { %2172 = vmatpush2.bf16.msra.mxu1 %v4077_v19 }
 0x139   :  { %2173 = vmatprep.subr.bf16.mxu1 %v4085_v20 }
 0x13a   :  { %2133 = vmatpush2.bf16.msra.mxu0 %v4080_v21 }
 0x13b   :  { %2134 = vmatprep.subr.bf16.mxu0 %v4088_v23 }
 0x13c   :  { %2174 = vmatpush2.bf16.msra.mxu1 %v4083_v24 }
 0x13d   :  { %2175 = vmatprep.subr.bf16.mxu1 %v4091_v25  ;;  %v4542_v25 = vld [vmem:[#allocation10 + $0x10] sm:$0xff] }
 0x13e   :  { %2135 = vmatpush2.bf16.msra.mxu0 %v4086_v26  ;;  %v4544_v26 = vld [vmem:[#allocation10 + $0x18] sm:$0xff] }
 0x13f   :  { %2186 = vmatprep.subr.bf16.mxu0 %v4094_v29  ;;  %v409_v29 = vrot.slane %v4544_v26, %v4518_v27 }
 0x140   :  { %2176 = vmatpush2.bf16.msra.mxu1 %v4089_v30 }
 0x141   :  { %v1892_v37 = vpop.f32.mrf.mxu0  ;;  %2137 = vmatmul.mubr.bf16.vlgmr.msra.gmra.mxu0 %v4495_v7  ;;  %v4098_v7 = vld [vmem:[#allocation5 + $0x700] ss:$24 sps:$4 sm:$0xff]  }
 0x142   :  { %v1893_v38 = vadd.f32 %v1892_v37, %v397_v32  ;;  %2187 = vmatpush1.bf16.msra.mxu0 %v4092_v33  ;;  %2218 = vmatprep.mubr.bf16.mxu0 %v4502_v36  ;;  %v1933_v40 = vpop.f32.mrf.mxu1 }
 0x143   :  { %v1894_v39 = vpop.f32.mrf.mxu0  ;;  %2178 = vmatmul.mubr.bf16.vlgmr.msra.gmra.mxu1 %v4497_v10  ;;  %2188 = vmatprep.subr.bf16.mxu0 %v4097_v34  ;;  %v4106_v10 = vld [vmem:[#allocation5 + $0x6a4] ss:$24 sps:$4 sm:$0xff]  }
 0x144   :  { %v1895_v52 = vadd.f32 %v1894_v39, %v401_v35  ;;  %v4531_v42 = vadd.f32 %v1933_v40, %v1893_v38  ;;  %v1935_v44 = vpop.f32.mrf.mxu1 }
 0x145   :  { %v1896_v43 = vpop.f32.mrf.mxu0 }
 0x146   :  { %v4533_v45 = vadd.f32 %v1935_v44, %v1895_v52  ;;  %2189 = vmatpush1.bf16.msra.mxu0 %v4095_v48  ;;  %v1937_v49 = vpop.f32.mrf.mxu1 }
 0x147   :  { %v1897_v46 = vpop.f32.mrf.mxu0  ;;  %2190 = vmatprep.subr.bf16.mxu0 %v4100_v41 }
 0x148   :  { %v1938_v36 = vpop.f32.mrf.mxu1 }
 0x14a   :  { %2191 = vmatpush1.bf16.msra.mxu0 %v4098_v7 }
 0x14b   :  { %2192 = vmatprep.subr.bf16.mxu0 %v4103_v47 }
 0x14e   :  { %2193 = vmatpush1.bf16.msra.mxu0 %v4101_v50 }
 0x14f   :  { %2194 = vmatprep.subr.bf16.mxu0 %v4106_v10  ;;  %v4554_v10 = vld [vmem:[#allocation10 + $0x20] sm:$0xff] }
 0x152   :  { %2195 = vmatpush1.bf16.msra.mxu0 %v4104_v51  ;;  %v4556_v51 = vld [vmem:[#allocation10 + $0x28] sm:$0xff] }
 0x153   :  { %2196 = vmatprep.subr.bf16.mxu0 %v4109_v53  ;;  %v413_v53 = vrot.slane %v4554_v10, %v4518_v27 }
 0x156   :  { %2197 = vmatpush1.bf16.msra.mxu0 %v4107_v54  ;;  %v417_v54 = vrot.slane %v4556_v51, %v4518_v27 }
 0x157   :  { %2198 = vmatprep.subr.bf16.mxu0 %v4112_v55 }
 0x15a   :  { %2199 = vmatpush1.bf16.msra.mxu0 %v4110_v56 }
 0x15b   :  { %2200 = vmatprep.subr.bf16.mxu0 %v4115_v57 }
 0x15e   :  { %2201 = vmatpush1.bf16.msra.mxu0 %v4113_v58 }
 0x15f   :  { %2202 = vmatprep.subr.bf16.mxu0 %v4118_v59 }
 0x162   :  { %2203 = vmatpush2.bf16.msra.mxu0 %v4116_v60 }
 0x163   :  { %2204 = vmatprep.subr.bf16.mxu0 %v4121_v61 }
 0x166   :  { %2205 = vmatpush2.bf16.msra.mxu0 %v4119_v62 }
 0x167   :  { %2206 = vmatprep.subr.bf16.mxu0 %v4124_v63 }
 0x16a   :  { %2207 = vmatpush2.bf16.msra.mxu0 %v4122_v0 }
 0x16b   :  { %2208 = vmatprep.subr.bf16.mxu0 %v4127_v1 }
 0x16e   :  { %2209 = vmatpush2.bf16.msra.mxu0 %v4125_v2 }
 0x16f   :  { %2210 = vmatprep.subr.bf16.mxu0 %v4130_v3 }
 0x172   :  { %2211 = vmatpush2.bf16.msra.mxu0 %v4128_v4 }
 0x173   :  { %2212 = vmatprep.subr.bf16.mxu0 %v4133_v5 }
 0x176   :  { %2213 = vmatpush2.bf16.msra.mxu0 %v4131_v6  ;;  %v4140_v6 = vld [vmem:[#allocation7 + $0x70] ss:$8 sps:$4 sm:$0xff]  }
 0x177   :  { %2214 = vmatprep.subr.bf16.mxu0 %v4136_v8  ;;  %v4142_v8 = vld [vmem:[#allocation7 + $0x74] ss:$8 sps:$4 sm:$0xff]  }
 0x178   :  { %2920 = vmatprep.subr.bf16.mxu1 %v4142_v8  ;;  %v4194_v8 = vld [vmem:[#allocation7 + $0xe0] ss:$8 sps:$4 sm:$0xff]  }
 0x179   :  { %2921 = vmatpush1.bf16.msra.mxu1 %v4140_v6  ;;  %v4196_v6 = vld [vmem:[#allocation7 + $0xe4] ss:$8 sps:$4 sm:$0xff]  }
 0x17a   :  { %2215 = vmatpush2.bf16.msra.mxu0 %v4134_v9  ;;  %v4143_v9 = vld [vmem:[#allocation7 + $0x170] ss:$8 sps:$4 sm:$0xff]  }
 0x17b   :  { %2216 = vmatprep.subr.bf16.mxu0 %v4139_v11  ;;  %v4145_v11 = vld [vmem:[#allocation7 + $0x174] ss:$8 sps:$4 sm:$0xff]  }
 0x17e   :  { %2217 = vmatpush2.bf16.msra.mxu0 %v4137_v12  ;;  %v4148_v12 = vld [vmem:[#allocation7 + $0x64] ss:$8 sps:$4 sm:$0xff]  }
 0x17f   :  { %2961 = vmatprep.subr.bf16.mxu0 %v4145_v11  ;;  %2922 = vmatprep.subr.bf16.mxu1 %v4148_v12  ;;  %v4202_v11 = vld [vmem:[#allocation7 + $0xd4] ss:$8 sps:$4 sm:$0xff]   ;;  %v4200_v12 = vld [vmem:[#allocation7 + $0xd0] ss:$8 sps:$4 sm:$0xff]  }
 0x181   :  { %v1974_v13 = vpop.f32.mrf.mxu0  ;;  %2219 = vmatmul.mubr.bf16.vlgmr.msra.gmra.mxu0 %v4505_v16  ;;  %v405_v16 = vrot.slane %v4542_v25, %v4518_v27 }
 0x182   :  { %v4537_v14 = vadd.f32 %v1974_v13, %v4531_v42  ;;  %v4151_v13 = vld [vmem:[#allocation7 + $0x164] ss:$8 sps:$4 sm:$0xff]   ;;  %2962 = vmatpush1.bf16.msra.mxu0 %v4143_v9 }
 0x183   :  { %v1976_v15 = vpop.f32.mrf.mxu0  ;;  %v2015_v17 = vpop.f32.mrf.mxu1  ;;  %2963 = vmatprep.subr.bf16.mxu0 %v4151_v13  ;;  %v4199_v9 = vld [vmem:[#allocation7 + $0x1e4] ss:$8 sps:$4 sm:$0xff]   ;;  %v4203_v13 = vld [vmem:[#allocation7 + $0x1d0] ss:$8 sps:$4 sm:$0xff]  }
 0x184   :  { %v4540_v18 = vadd.f32 %v1976_v15, %v4533_v45  ;;  %v2016_v30 = vadd.f32 %v2015_v17, %v405_v16  ;;  %v4146_v15 = vld [vmem:[#allocation7 + $0x60] ss:$8 sps:$4 sm:$0xff]   ;;  %v4163_v16 = vld [vmem:[#allocation7 + $0x144] ss:$8 sps:$4 sm:$0xff]  }
 0x185   :  { %v1978_v19 = vpop.f32.mrf.mxu0  ;;  %v2017_v20 = vpop.f32.mrf.mxu1  ;;  %v4149_v17 = vld [vmem:[#allocation7 + $0x160] ss:$8 sps:$4 sm:$0xff]   ;;  %2923 = vmatpush1.bf16.msra.mxu1 %v4146_v15  ;;  %v4205_v15 = vld [vmem:[#allocation7 + $0x1d4] ss:$8 sps:$4 sm:$0xff]  }
 0x186   :  { %v2018_v32 = vadd.f32 %v2017_v20, %v409_v29  ;;  %v2227_v55 = vadd.f32 %v4540_v18, %v4537_v14  ;;  %v4154_v19 = vld [vmem:[#allocation7 + $0x54] ss:$8 sps:$4 sm:$0xff]   ;;  %2964 = vmatpush1.bf16.msra.mxu0 %v4149_v17  ;;  %v4158_v29 = vld [vmem:[#allocation7 + $0x40] ss:$8 sps:$4 sm:$0xff]   ;;  %v4208_v17 = vld [vmem:[#allocation7 + $0xc4] ss:$8 sps:$4 sm:$0xff]  }
 0x187   :  { %v1979_v21 = vpop.f32.mrf.mxu0  ;;  %v2019_v23 = vpop.f32.mrf.mxu1  ;;  %v4157_v20 = vld [vmem:[#allocation7 + $0x154] ss:$8 sps:$4 sm:$0xff]   ;;  %2924 = vmatprep.subr.bf16.mxu1 %v4154_v19  ;;  %v4206_v19 = vld [vmem:[#allocation7 + $0xc0] ss:$8 sps:$4 sm:$0xff]  }
 0x188   :  { %v4152_v21 = vld [vmem:[#allocation7 + $0x50] ss:$8 sps:$4 sm:$0xff]   ;;  %2965 = vmatprep.subr.bf16.mxu0 %v4157_v20  ;;  %v4211_v20 = vld [vmem:[#allocation7 + $0x1c4] ss:$8 sps:$4 sm:$0xff]  }
 0x189   :  { %v2020_v24 = vpop.f32.mrf.mxu1  ;;  %v4155_v23 = vld [vmem:[#allocation7 + $0x150] ss:$8 sps:$4 sm:$0xff]   ;;  %2925 = vmatpush1.bf16.msra.mxu1 %v4152_v21  ;;  %v4209_v21 = vld [vmem:[#allocation7 + $0x1c0] ss:$8 sps:$4 sm:$0xff]  }
 0x18a   :  { %v4160_v24 = vld [vmem:[#allocation7 + $0x44] ss:$8 sps:$4 sm:$0xff]   ;;  %2966 = vmatpush1.bf16.msra.mxu0 %v4155_v23  ;;  %v4214_v23 = vld [vmem:[#allocation7 + $0xb4] ss:$8 sps:$4 sm:$0xff]  }
 0x18b   :  { %2926 = vmatprep.subr.bf16.mxu1 %v4160_v24  ;;  %2967 = vmatprep.subr.bf16.mxu0 %v4163_v16  ;;  %v4217_v24 = vld [vmem:[#allocation7 + $0x1b4] ss:$8 sps:$4 sm:$0xff]   ;;  %v4212_v16 = vld [vmem:[#allocation7 + $0xb0] ss:$8 sps:$4 sm:$0xff]  }
 0x18d   :  { %2927 = vmatpush1.bf16.msra.mxu1 %v4158_v29  ;;  %v4215_v29 = vld [vmem:[#allocation7 + $0x1b0] ss:$8 sps:$4 sm:$0xff]  }
 0x1c1   :  { %v2056_v33 = vpop.f32.mrf.mxu0 }
 0x1c2   :  { %v2057_v34 = vadd.f32 %v2056_v33, %v2016_v30  ;;  %v4161_v30 = vld [vmem:[#allocation7 + $0x140] ss:$8 sps:$4 sm:$0xff]   ;;  %v4169_v33 = vld [vmem:[#allocation7 + $0x134] ss:$8 sps:$4 sm:$0xff]  }
 0x1c3   :  { %v2058_v35 = vpop.f32.mrf.mxu0  ;;  %v2097_v37 = vpop.f32.mrf.mxu1  ;;  %2968 = vmatpush1.bf16.msra.mxu0 %v4161_v30  ;;  %v4220_v30 = vld [vmem:[#allocation7 + $0xa4] ss:$8 sps:$4 sm:$0xff]  }
 0x1c4   :  { %v2059_v38 = vadd.f32 %v2058_v35, %v2018_v32  ;;  %v4550_v48 = vadd.f32 %v2097_v37, %v2057_v34  ;;  %v4166_v32 = vld [vmem:[#allocation7 + $0x34] ss:$8 sps:$4 sm:$0xff]   ;;  %v4164_v34 = vld [vmem:[#allocation7 + $0x30] ss:$8 sps:$4 sm:$0xff]   ;;  %v4172_v37 = vld [vmem:[#allocation7 + $0x24] ss:$8 sps:$4 sm:$0xff]   ;;  %2969 = vmatprep.subr.bf16.mxu0 %v4169_v33 }
 0x1c5   :  { %v2060_v39 = vpop.f32.mrf.mxu0  ;;  %v2099_v40 = vpop.f32.mrf.mxu1  ;;  %2928 = vmatprep.subr.bf16.mxu1 %v4166_v32  ;;  %v4167_v35 = vld [vmem:[#allocation7 + $0x130] ss:$8 sps:$4 sm:$0xff]   ;;  %v4223_v32 = vld [vmem:[#allocation7 + $0x1a4] ss:$8 sps:$4 sm:$0xff]   ;;  %v4218_v33 = vld [vmem:[#allocation7 + $0xa0] ss:$8 sps:$4 sm:$0xff]  }
 0x1c6   :  { %v4552_v41 = vadd.f32 %v2099_v40, %v2059_v38  ;;  %v2228_v57 = vadd.f32 %v2227_v55, %v4550_v48  ;;  %v4175_v38 = vld [vmem:[#allocation7 + $0x124] ss:$8 sps:$4 sm:$0xff]   ;;  %2929 = vmatpush1.bf16.msra.mxu1 %v4164_v34  ;;  %v4170_v39 = vld [vmem:[#allocation7 + $0x20] ss:$8 sps:$4 sm:$0xff]  }
 0x1c7   :  { %v2061_v52 = vpop.f32.mrf.mxu0  ;;  %v2101_v42 = vpop.f32.mrf.mxu1  ;;  %2970 = vmatpush1.bf16.msra.mxu0 %v4167_v35  ;;  %2930 = vmatprep.subr.bf16.mxu1 %v4172_v37  ;;  %v4173_v40 = vld [vmem:[#allocation7 + $0x120] ss:$8 sps:$4 sm:$0xff]   ;;  %v4226_v35 = vld [vmem:[#allocation7 + $0x94] ss:$8 sps:$4 sm:$0xff]  }
 0x1c8   :  { %v2229_v61 = vadd.f32 %v2228_v57, %v4552_v41  ;;  %v4178_v52 = vld [vmem:[#allocation7 + $0x14] ss:$8 sps:$4 sm:$0xff]   ;;  %2971 = vmatprep.subr.bf16.mxu0 %v4175_v38  ;;  %v4221_v34 = vld [vmem:[#allocation7 + $0x1a0] ss:$8 sps:$4 sm:$0xff]   ;;  %v4224_v38 = vld [vmem:[#allocation7 + $0x90] ss:$8 sps:$4 sm:$0xff]  }
 0x1c9   :  { %v2102_v43 = vpop.f32.mrf.mxu1  ;;  %v4181_v42 = vld [vmem:[#allocation7 + $0x114] ss:$8 sps:$4 sm:$0xff]  }
 0x1ca   :  { %2931 = vmatpush1.bf16.msra.mxu1 %v4170_v39  ;;  %v4176_v43 = vld [vmem:[#allocation7 + $0x10] ss:$8 sps:$4 sm:$0xff]   ;;  %v4229_v37 = vld [vmem:[#allocation7 + $0x194] ss:$8 sps:$4 sm:$0xff]  }
 0x1cb   :  { %2972 = vmatpush1.bf16.msra.mxu0 %v4173_v40  ;;  %2932 = vmatprep.subr.bf16.mxu1 %v4178_v52  ;;  %v4227_v39 = vld [vmem:[#allocation7 + $0x190] ss:$8 sps:$4 sm:$0xff]   ;;  %v4232_v40 = vld [vmem:[#allocation7 + $0x84] ss:$8 sps:$4 sm:$0xff]  }
 0x1cc   :  { %2973 = vmatprep.subr.bf16.mxu0 %v4181_v42  ;;  %v4235_v52 = vld [vmem:[#allocation7 + $0x184] ss:$8 sps:$4 sm:$0xff]   ;;  %v4230_v42 = vld [vmem:[#allocation7 + $0x80] ss:$8 sps:$4 sm:$0xff]  }
 0x1ce   :  { %2933 = vmatpush1.bf16.msra.mxu1 %v4176_v43  ;;  %v4233_v43 = vld [vmem:[#allocation7 + $0x180] ss:$8 sps:$4 sm:$0xff]  }
 0x201   :  { %v2138_v44 = vpop.f32.mrf.mxu0 }
 0x202   :  { %v2139_v56 = vadd.f32 %v2138_v44, %v413_v53  ;;  %v4179_v44 = vld [vmem:[#allocation7 + $0x110] ss:$8 sps:$4 sm:$0xff]  }
 0x203   :  { %v2140_v45 = vpop.f32.mrf.mxu0  ;;  %v2179_v7 = vpop.f32.mrf.mxu1  ;;  %2974 = vmatpush1.bf16.msra.mxu0 %v4179_v44  ;;  %v4191_v53 = vld [vmem:[#allocation7 + $0x1f0] ss:$8 sps:$4 sm:$0xff]   ;;  %v4238_v44 = vld [vmem:[#allocation7 + $0x274] ss:$8 sps:$4 sm:$0xff]  }
 0x204   :  { %v2141_v58 = vadd.f32 %v2140_v45, %v417_v54  ;;  %v2180_v59 = vadd.f32 %v2179_v7, %v2139_v56  ;;  %v4184_v45 = vld [vmem:[#allocation7 + $0x4] ss:$8 sps:$4 sm:$0xff]  }
 0x205   :  { %v2142_v46 = vpop.f32.mrf.mxu0  ;;  %v2181_v47 = vpop.f32.mrf.mxu1  ;;  %v4187_v7 = vld [vmem:[#allocation7 + $0x104] ss:$8 sps:$4 sm:$0xff]   ;;  %2934 = vmatprep.subr.bf16.mxu1 %v4184_v45 }
 0x206   :  { %v2182_v62 = vadd.f32 %v2181_v47, %v2141_v58  ;;  %v4182_v46 = vld [vmem:[#allocation7] ss:$8 sps:$4 sm:$0xff]   ;;  %2975 = vmatprep.subr.bf16.mxu0 %v4187_v7 }
 0x207   :  { %v2143_v49 = vpop.f32.mrf.mxu0  ;;  %v2183_v36 = vpop.f32.mrf.mxu1  ;;  %v4185_v47 = vld [vmem:[#allocation7 + $0x100] ss:$8 sps:$4 sm:$0xff]   ;;  %2935 = vmatpush1.bf16.msra.mxu1 %v4182_v46 }
 0x208   :  { %v4190_v49 = vld [vmem:[#allocation7 + $0xf4] ss:$8 sps:$4 sm:$0xff]   ;;  %2976 = vmatpush1.bf16.msra.mxu0 %v4185_v47  ;;  %v4603_v47 = vsub.s32 1, %v4515_v22 }
 0x209   :  { %v2184_v50 = vpop.f32.mrf.mxu1  ;;  %v4193_v36 = vld [vmem:[#allocation7 + $0x1f4] ss:$8 sps:$4 sm:$0xff]   ;;  %2936 = vmatprep.subr.bf16.mxu1 %v4190_v49  ;;  %v4606_v49 = vsub.s32 2, %v4515_v22 }
 0x20a   :  { %v4188_v50 = vld [vmem:[#allocation7 + $0xf0] ss:$8 sps:$4 sm:$0xff]   ;;  %2977 = vmatprep.subr.bf16.mxu0 %v4193_v36  ;;  %v2267_v36 = vrot.slane %v4520_v28, %v4603_v47 }
 0x20b   :  { %2937 = vmatpush2.bf16.msra.mxu1 %v4188_v50  ;;  %v2271_v50 = vrot.slane %v4522_v31, %v4603_v47 }
 0x20c   :  { %2978 = vmatpush2.bf16.msra.mxu0 %v4191_v53  ;;  %2938 = vmatprep.subr.bf16.mxu1 %v4196_v6  ;;  %v2275_v53 = vrot.slane %v4542_v25, %v4603_v47 }
 0x20d   :  { %2979 = vmatprep.subr.bf16.mxu0 %v4199_v9 }
 0x20f   :  { %2939 = vmatpush2.bf16.msra.mxu1 %v4194_v8 }
 0x210   :  { %2940 = vmatprep.subr.bf16.mxu1 %v4202_v11 }
 0x213   :  { %2941 = vmatpush2.bf16.msra.mxu1 %v4200_v12 }
 0x214   :  { %2942 = vmatprep.subr.bf16.mxu1 %v4208_v17 }
 0x217   :  { %2943 = vmatpush2.bf16.msra.mxu1 %v4206_v19 }
 0x218   :  { %2944 = vmatprep.subr.bf16.mxu1 %v4214_v23 }
 0x21b   :  { %2945 = vmatpush2.bf16.msra.mxu1 %v4212_v16  ;;  %v4241_v16 = vld [vmem:[#allocation7 + $0x264] ss:$8 sps:$4 sm:$0xff]  }
 0x21c   :  { %2946 = vmatprep.subr.bf16.mxu1 %v4220_v30  ;;  %v4239_v30 = vld [vmem:[#allocation7 + $0x260] ss:$8 sps:$4 sm:$0xff]  }
 0x21f   :  { %2947 = vmatpush2.bf16.msra.mxu1 %v4218_v33  ;;  %v4242_v33 = vld [vmem:[#allocation7 + $0x250] ss:$8 sps:$4 sm:$0xff]  }
 0x220   :  { %2948 = vmatprep.subr.bf16.mxu1 %v4226_v35  ;;  %v4245_v35 = vld [vmem:[#allocation7 + $0x240] ss:$8 sps:$4 sm:$0xff]  }
 0x223   :  { %2949 = vmatpush2.bf16.msra.mxu1 %v4224_v38  ;;  %v4248_v38 = vld [vmem:[#allocation7 + $0x230] ss:$8 sps:$4 sm:$0xff]  }
 0x224   :  { %2950 = vmatprep.subr.bf16.mxu1 %v4232_v40  ;;  %v4251_v40 = vld [vmem:[#allocation7 + $0x220] ss:$8 sps:$4 sm:$0xff]  }
 0x227   :  { %2951 = vmatpush2.bf16.msra.mxu1 %v4230_v42  ;;  %v4254_v42 = vld [vmem:[#allocation7 + $0x210] ss:$8 sps:$4 sm:$0xff]  }
 0x228   :  { %3002 = vmatprep.subr.bf16.mxu1 %v4238_v44  ;;  %v4257_v44 = vld [vmem:[#allocation7 + $0x200] ss:$8 sps:$4 sm:$0xff]  }
 0x241   :  { %v2220_v60 = vpop.f32.mrf.mxu0 }
 0x242   :  { %v4566_v63 = vadd.f32 %v2220_v60, %v2180_v59 }
 0x243   :  { %v2222_v0 = vpop.f32.mrf.mxu0 }
 0x244   :  { %v4568_v1 = vadd.f32 %v2222_v0, %v2182_v62  ;;  %v2230_v2 = vadd.f32 %v2229_v61, %v4566_v63 }
 0x245   :  { %v2224_v3 = vpop.f32.mrf.mxu0 }
 0x246   :  { %v2231_v4 = vadd.f32 %v2230_v2, %v4568_v1 }
 0x247   :  { %v2225_v5 = vpop.f32.mrf.mxu0 }
 0x248   :  { %2232 = vadd.xlane.f32.xlu0 %v2231_v4 }
 0x2d1   :  { %v2233_v54 = vpop.xlane.xlu0 %2232 }
 0x2d2   :  { %v2235_v55 = vmul.f32 0.0013020834, %v2233_v54  ;;  %v2305_v54 = vrot.slane %v4542_v25, %v4606_v49 }
 0x2d4   :  { %v4573_v56 = vsub.f32 %v4537_v14, %v2235_v55  ;;  %v4576_v57 = vsub.f32 %v4540_v18, %v2235_v55  ;;  %v4579_v58 = vsub.f32 %v4550_v48, %v2235_v55  ;;  %v4582_v59 = vsub.f32 %v4552_v41, %v2235_v55 }
 0x2d5   :  { %v4589_v62 = vsub.f32 %v4566_v63, %v2235_v55  ;;  %v4594_v0 = vsub.f32 %v4568_v1, %v2235_v55  ;;  %v4197_v1 = vld [vmem:[#allocation7 + $0x1e0] ss:$8 sps:$4 sm:$0xff]   ;;  %v2279_v55 = vrot.slane %v4544_v26, %v4603_v47 }
 0x2d6   :  { %v2242_v60 = vmul.f32 %v4573_v56, %v4573_v56  ;;  %v2243_v61 = vmul.f32 %v4576_v57, %v4576_v57  ;;  %v2244_v14 = vmul.f32 %v4579_v58, %v4579_v58  ;;  %v2245_v48 = vmul.f32 %v4582_v59, %v4582_v59  ;;  %2980 = vmatpush2.bf16.msra.mxu0 %v4197_v1 }
 0x2d7   :  { %v2246_v2 = vmul.f32 %v4589_v62, %v4589_v62  ;;  %v2247_v4 = vmul.f32 %v4594_v0, %v4594_v0  ;;  %2981 = vmatprep.subr.bf16.mxu0 %v4205_v15 }
 0x2d8   :  { %v2248_v18 = vadd.f32 %v2243_v61, %v2242_v60  ;;  %v2283_v60 = vrot.slane %v4554_v10, %v4603_v47 }
 0x2da   :  { %v2249_v41 = vadd.f32 %v2248_v18, %v2244_v14  ;;  %2982 = vmatpush2.bf16.msra.mxu0 %v4203_v13  ;;  %v2287_v14 = vrot.slane %v4556_v51, %v4603_v47  ;;  %v2301_v18 = vrot.slane %v4522_v31, %v4606_v49  ;;  %v2317_v31 = vrot.slane %v4556_v51, %v4606_v49 }
 0x2db   :  { %2983 = vmatprep.subr.bf16.mxu0 %v4211_v20 }
 0x2dc   :  { %v2250_v3 = vadd.f32 %v2249_v41, %v2245_v48  ;;  %v2309_v48 = vrot.slane %v4544_v26, %v4606_v49  ;;  %v2297_v41 = vrot.slane %v4520_v28, %v4606_v49 }
 0x2de   :  { %v2251_v63 = vadd.f32 %v2250_v3, %v2246_v2  ;;  %2984 = vmatpush2.bf16.msra.mxu0 %v4209_v21  ;;  %v4236_v21 = vld [vmem:[#allocation7 + $0x270] ss:$8 sps:$4 sm:$0xff]  }
 0x2df   :  { %2985 = vmatprep.subr.bf16.mxu0 %v4217_v24 }
 0x2e0   :  { %v2252_v5 = vadd.f32 %v2251_v63, %v2247_v4  ;;  %v2313_v63 = vrot.slane %v4554_v10, %v4606_v49 }
 0x2e2   :  { %2253 = vadd.xlane.f32.xlu0 %v2252_v5  ;;  %2986 = vmatpush2.bf16.msra.mxu0 %v4215_v29 }
 0x2e3   :  { %2987 = vmatprep.subr.bf16.mxu0 %v4223_v32  ;;  %v4244_v32 = vld [vmem:[#allocation7 + $0x254] ss:$8 sps:$4 sm:$0xff]  }
 0x2e6   :  { %2988 = vmatpush2.bf16.msra.mxu0 %v4221_v34  ;;  %v4247_v34 = vld [vmem:[#allocation7 + $0x244] ss:$8 sps:$4 sm:$0xff]  }
 0x2e7   :  { %2989 = vmatprep.subr.bf16.mxu0 %v4229_v37  ;;  %v4250_v37 = vld [vmem:[#allocation7 + $0x234] ss:$8 sps:$4 sm:$0xff]  }
 0x2ea   :  { %2990 = vmatpush2.bf16.msra.mxu0 %v4227_v39  ;;  %v4253_v39 = vld [vmem:[#allocation7 + $0x224] ss:$8 sps:$4 sm:$0xff]  }
 0x2eb   :  { %2991 = vmatprep.subr.bf16.mxu0 %v4235_v52  ;;  %v4256_v52 = vld [vmem:[#allocation7 + $0x214] ss:$8 sps:$4 sm:$0xff]  }
 0x2ee   :  { %2992 = vmatpush2.bf16.msra.mxu0 %v4233_v43  ;;  %v4259_v43 = vld [vmem:[#allocation7 + $0x204] ss:$8 sps:$4 sm:$0xff]  }
 0x36b   :  { %v2254_v45 = vpop.xlane.xlu0 %2253 }
 0x36c   :  { %v2255_v7 = vmul.f32 0.0013020834, %v2254_v45  ;;  %v4262_v45 = vld [vmem:[#allocation7 + $0x2f4] ss:$8 sps:$4 sm:$0xff]  }
 0x36e   :  { %v2256_v46 = vadd.f32 1e-05, %v2255_v7  ;;  %v4260_v7 = vld [vmem:[#allocation7 + $0x2f0] ss:$8 sps:$4 sm:$0xff]  }
 0x370   :  { %4300 = vrsqrt.f32 %v2256_v46  ;;  %v4265_v46 = vld [vmem:[#allocation7 + $0x2e4] ss:$8 sps:$4 sm:$0xff]  }
 0x37d   :  { %v4301_v61 = vpop.eup %4300 }
 0x37e   :  { %v2259_v25 = vmul.f32 %v4301_v61, %v4576_v57  ;;  %v2261_v2 = vmul.f32 %v4301_v61, %v4582_v59  ;;  %v2258_v3 = vmul.f32 %v4301_v61, %v4573_v56  ;;  %v2260_v4 = vmul.f32 %v4301_v61, %v4579_v58 }
 0x37f   :  { %v2263_v5 = vmul.f32 %v4301_v61, %v4594_v0  ;;  %v2262_v26 = vmul.f32 %v4301_v61, %v4589_v62  ;;  %v4272_v61 = vld [vmem:[#allocation7 + $0x2b0] ss:$8 sps:$4 sm:$0xff]  }
 0x380   :  { %v2289_v6 = vmul.f32 %v2271_v50, %v2259_v25  ;;  %v2291_v8 = vmul.f32 %v2279_v55, %v2261_v2  ;;  %v2288_v9 = vmul.f32 %v2267_v36, %v2258_v3  ;;  %v2290_v57 = vmul.f32 %v2275_v53, %v2260_v4  ;;  %v4263_v36 = vld [vmem:[#allocation7 + $0x2e0] ss:$8 sps:$4 sm:$0xff]   ;;  %v4268_v50 = vld [vmem:[#allocation7 + $0x2d4] ss:$8 sps:$4 sm:$0xff]   ;;  %v4266_v53 = vld [vmem:[#allocation7 + $0x2d0] ss:$8 sps:$4 sm:$0xff]  }
 0x381   :  { %v2293_v1 = vmul.f32 %v2287_v14, %v2263_v5  ;;  %v2292_v59 = vmul.f32 %v2283_v60, %v2262_v26  ;;  %v4269_v55 = vld [vmem:[#allocation7 + $0x2c0] ss:$8 sps:$4 sm:$0xff]   ;;  %v4274_v60 = vld [vmem:[#allocation7 + $0x2b4] ss:$8 sps:$4 sm:$0xff]   ;;  %v4277_v14 = vld [vmem:[#allocation7 + $0x2a4] ss:$8 sps:$4 sm:$0xff]  }
 0x382   :  { %v2319_v11 = vadd.f32 %v2301_v18, %v2289_v6  ;;  %v2321_v56 = vadd.f32 %v2309_v48, %v2291_v8  ;;  %v2318_v12 = vadd.f32 %v2297_v41, %v2288_v9  ;;  %v2320_v58 = vadd.f32 %v2305_v54, %v2290_v57  ;;  %v4271_v54 = vld [vmem:[#allocation7 + $0x2c4] ss:$8 sps:$4 sm:$0xff]   ;;  %v4275_v18 = vld [vmem:[#allocation7 + $0x2a0] ss:$8 sps:$4 sm:$0xff]   ;;  %v4280_v48 = vld [vmem:[#allocation7 + $0x294] ss:$8 sps:$4 sm:$0xff]  }
 0x383   :  { %v2323_v13 = vadd.f32 %v2317_v31, %v2293_v1  ;;  %v4638_v15 = vadd.f32 %v2313_v63, %v2292_v59  ;;  %v4278_v41 = vld [vmem:[#allocation7 + $0x290] ss:$8 sps:$4 sm:$0xff]   ;;  %v4283_v25 = vld [vmem:[#allocation7 + $0x284] ss:$8 sps:$4 sm:$0xff]   ;;  %v4281_v2 = vld [vmem:[#allocation7 + $0x280] ss:$8 sps:$4 sm:$0xff]  }
 0x384   :  { %v2325_v10 = vmax.f32 %v2319_v11, 0.0  ;;  %v2327_v0 = vmax.f32 %v2321_v56, 0.0  ;;  %v2324_v17 = vmax.f32 %v2318_v12, 0.0  ;;  %v2326_v19 = vmax.f32 %v2320_v58, 0.0  ;;  %v4641_v1 = vld [vmem:[#allocation10 + $0x30] sm:$0xff]  ;;  %v4643_v59 = vld [vmem:[#allocation10 + $0x38] sm:$0xff] }
 0x385   :  { %v2329_v51 = vmax.f32 %v2323_v13, 0.0  ;;  %v2328_v3 = vmax.f32 %v4638_v15, 0.0  ;;  %v2435_v11 = vrot.slane %v4641_v1, %v4518_v27  ;;  %v2439_v56 = vrot.slane %v4643_v59, %v4518_v27 }
 0x386   :  { %v2331_v20 = vpack.c.bf16 %v2325_v10, %v2325_v10  ;;  %v2333_v62 = vpack.c.bf16 %v2327_v0, %v2327_v0  ;;  %v2330_v23 = vpack.c.bf16 %v2324_v17, %v2324_v17  ;;  %v2332_v24 = vpack.c.bf16 %v2326_v19, %v2326_v19 }
 0x387   :  { %v2335_v29 = vpack.c.bf16 %v2329_v51, %v2329_v51  ;;  %v2334_v4 = vpack.c.bf16 %v2328_v3, %v2328_v3 }
 0x388   :  { %2952 = vmatprep.mubr.bf16.mxu1 %v2331_v20  ;;  %2993 = vmatprep.mubr.bf16.mxu0 %v2333_v62 }
 0x389   :  { %2953 = vmatmul.mubr.bf16.vlgmr.msra.gmra.mxu1 %v2330_v23  ;;  %2994 = vmatmul.mubr.bf16.vlgmr.msra.gmra.mxu0 %v2332_v24  ;;  %v4285_v23 = vld [vmem:[#allocation8 + $0x38] sm:$0xff]  }
 0x38a   :  { %3003 = vmatpush1.bf16.msra.mxu1 %v4236_v21  ;;  %3034 = vmatprep.mubr.bf16.mxu1 %v2335_v29  ;;  %v4284_v21 = vld [vmem:[#allocation8 + $0x78] sm:$0xff]  }
 0x38b   :  { %3004 = vmatprep.subr.bf16.mxu1 %v4241_v16  ;;  %3674 = vmatprep.subr.bf16.mxu0 %v4284_v21 }
 0x38c   :  { %3675 = vmatpush3.bf16.msra.mxu0 %v4285_v23 }
 0x38e   :  { %3005 = vmatpush1.bf16.msra.mxu1 %v4239_v30 }
 0x38f   :  { %3006 = vmatprep.subr.bf16.mxu1 %v4244_v32 }
 0x392   :  { %3007 = vmatpush1.bf16.msra.mxu1 %v4242_v33 }
 0x393   :  { %3008 = vmatprep.subr.bf16.mxu1 %v4247_v34  ;;  %v4286_v34 = vld [vmem:[#allocation8 + $0x70] sm:$0xff]  }
 0x394   :  { %3676 = vmatprep.subr.bf16.mxu0 %v4286_v34 }
 0x396   :  { %3009 = vmatpush1.bf16.msra.mxu1 %v4245_v35  ;;  %v4287_v35 = vld [vmem:[#allocation8 + $0x30] sm:$0xff]  }
 0x397   :  { %3010 = vmatprep.subr.bf16.mxu1 %v4250_v37  ;;  %3677 = vmatpush3.bf16.msra.mxu0 %v4287_v35  ;;  %v4288_v37 = vld [vmem:[#allocation8 + $0x68] sm:$0xff]  }
 0x398   :  { %3678 = vmatprep.subr.bf16.mxu0 %v4288_v37 }
 0x39a   :  { %3011 = vmatpush1.bf16.msra.mxu1 %v4248_v38  ;;  %v4289_v38 = vld [vmem:[#allocation8 + $0x28] sm:$0xff]  }
 0x39b   :  { %3012 = vmatprep.subr.bf16.mxu1 %v4253_v39  ;;  %v4290_v39 = vld [vmem:[#allocation8 + $0x60] sm:$0xff]   ;;  %3679 = vmatpush3.bf16.msra.mxu0 %v4289_v38 }
 0x39c   :  { %3680 = vmatprep.subr.bf16.mxu0 %v4290_v39 }
 0x39e   :  { %3013 = vmatpush1.bf16.msra.mxu1 %v4251_v40  ;;  %v4291_v40 = vld [vmem:[#allocation8 + $0x20] sm:$0xff]  }
 0x39f   :  { %3014 = vmatprep.subr.bf16.mxu1 %v4256_v52  ;;  %v4292_v52 = vld [vmem:[#allocation8 + $0x58] sm:$0xff]   ;;  %3681 = vmatpush3.bf16.msra.mxu0 %v4291_v40 }
 0x3a0   :  { %3682 = vmatprep.subr.bf16.mxu0 %v4292_v52 }
 0x3a2   :  { %3015 = vmatpush1.bf16.msra.mxu1 %v4254_v42  ;;  %v4293_v42 = vld [vmem:[#allocation8 + $0x18] sm:$0xff]  }
 0x3a3   :  { %3016 = vmatprep.subr.bf16.mxu1 %v4259_v43  ;;  %v4294_v43 = vld [vmem:[#allocation8 + $0x50] sm:$0xff]   ;;  %3683 = vmatpush3.bf16.msra.mxu0 %v4293_v42 }
 0x3a4   :  { %3684 = vmatprep.subr.bf16.mxu0 %v4294_v43 }
 0x3a6   :  { %3017 = vmatpush1.bf16.msra.mxu1 %v4257_v44  ;;  %v4295_v44 = vld [vmem:[#allocation8 + $0x10] sm:$0xff]  }
 0x3a7   :  { %3018 = vmatprep.subr.bf16.mxu1 %v4262_v45  ;;  %v4296_v45 = vld [vmem:[#allocation8 + $0x48] sm:$0xff]   ;;  %3685 = vmatpush3.bf16.msra.mxu0 %v4295_v44 }
 0x3a8   :  { %3686 = vmatprep.subr.bf16.mxu0 %v4296_v45 }
 0x3aa   :  { %3019 = vmatpush2.bf16.msra.mxu1 %v4260_v7  ;;  %v4297_v7 = vld [vmem:[#allocation8 + $0x8] sm:$0xff]  }
 0x3ab   :  { %3020 = vmatprep.subr.bf16.mxu1 %v4265_v46  ;;  %v4298_v46 = vld [vmem:[#allocation8 + $0x40] sm:$0xff]   ;;  %3687 = vmatpush3.bf16.msra.mxu0 %v4297_v7 }
 0x3ac   :  { %3688 = vmatprep.subr.bf16.mxu0 %v4298_v46 }
 0x3ae   :  { %3021 = vmatpush2.bf16.msra.mxu1 %v4263_v36  ;;  %v4299_v36 = vld [vmem:[#allocation8] sm:$0xff]  }
 0x3af   :  { %3022 = vmatprep.subr.bf16.mxu1 %v4268_v50  ;;  %3689 = vmatpush3.bf16.msra.mxu0 %v4299_v36 }
 0x3b2   :  { %3023 = vmatpush2.bf16.msra.mxu1 %v4266_v53 }
 0x3b3   :  { %3024 = vmatprep.subr.bf16.mxu1 %v4271_v54 }
 0x3b6   :  { %3025 = vmatpush2.bf16.msra.mxu1 %v4269_v55  ;;  %v3063_v55 = vrot.slane %v4641_v1, %v4603_v47 }
 0x3b7   :  { %3026 = vmatprep.subr.bf16.mxu1 %v4274_v60  ;;  %v3067_v60 = vrot.slane %v4643_v59, %v4603_v47  ;;  %v3118_v47 = vsub.s32 3, %v4515_v22 }
 0x3ba   :  { %3027 = vmatpush2.bf16.msra.mxu1 %v4272_v61 }
 0x3bb   :  { %3028 = vmatprep.subr.bf16.mxu1 %v4277_v14  ;;  %v3073_v14 = vrot.slane %v4641_v1, %v4606_v49 }
 0x3be   :  { %3029 = vmatpush2.bf16.msra.mxu1 %v4275_v18 }
 0x3bf   :  { %3030 = vmatprep.subr.bf16.mxu1 %v4280_v48  ;;  %v3077_v48 = vrot.slane %v4643_v59, %v4606_v49 }
 0x3c2   :  { %3031 = vmatpush2.bf16.msra.mxu1 %v4278_v41 }
 0x3c3   :  { %3032 = vmatprep.subr.bf16.mxu1 %v4283_v25 }
 0x3c6   :  { %3033 = vmatpush2.bf16.msra.mxu1 %v4281_v2 }
 0x3c9   :  { %3035 = vmatmul.mubr.bf16.vlgmr.msra.gmra.mxu1 %v2334_v4 }
 0x449   :  { %v2954_v63 = vpop.f32.mrf.mxu1  ;;  %v2995_v5 = vpop.f32.mrf.mxu0 }
 0x44a   :  { %v2955_v12 = vadd.f32 %v2954_v63, %v2435_v11 }
 0x44b   :  { %v2956_v31 = vpop.f32.mrf.mxu1  ;;  %v2997_v26 = vpop.f32.mrf.mxu0 }
 0x44c   :  { %v2957_v58 = vadd.f32 %v2956_v31, %v2439_v56  ;;  %v2996_v15 = vadd.f32 %v2995_v5, %v2955_v12 }
 0x44d   :  { %v2958_v6 = vpop.f32.mrf.mxu1  ;;  %v2999_v8 = vpop.f32.mrf.mxu0 }
 0x44e   :  { %v2998_v10 = vadd.f32 %v2997_v26, %v2957_v58  ;;  %v3119_v8 = vrot.slane %v4520_v28, %v3118_v47 }
 0x44f   :  { %v2959_v9 = vpop.f32.mrf.mxu1  ;;  %v3000_v57 = vpop.f32.mrf.mxu0 }
 0x489   :  { %v3036_v13 = vpop.f32.mrf.mxu1 }
 0x48a   :  { %v3037_v17 = vadd.f32 %v3036_v13, %v2996_v15 }
 0x48b   :  { %v3038_v0 = vpop.f32.mrf.mxu1 }
 0x48c   :  { %v3039_v19 = vadd.f32 %v3038_v0, %v2998_v10 }
 0x48d   :  { %v3040_v51 = vpop.f32.mrf.mxu1 }
 0x48e   :  { %v3043_v20 = vadd.f32 %v3039_v19, %v3037_v17 }
 0x48f   :  { %v3041_v62 = vpop.f32.mrf.mxu1 }
 0x490   :  { %3044 = vadd.xlane.f32.xlu1 %v3043_v20 }
 0x519   :  { %v3045_v24 = vpop.xlane.xlu1 %3044 }
 0x51a   :  { %v3047_v16 = vmul.f32 0.00390625, %v3045_v24 }
 0x51c   :  { %v3048_v29 = vsub.f32 %v3037_v17, %v3047_v16  ;;  %v3049_v27 = vsub.f32 %v3039_v19, %v3047_v16 }
 0x51e   :  { %v3050_v30 = vmul.f32 %v3048_v29, %v3048_v29  ;;  %v3051_v32 = vmul.f32 %v3049_v27, %v3049_v27 }
 0x520   :  { %v3052_v33 = vadd.f32 %v3051_v32, %v3050_v30 }
 0x522   :  { %3053 = vadd.xlane.f32.xlu1 %v3052_v33 }
 0x5ab   :  { %v3054_v50 = vpop.xlane.xlu1 %3053 }
 0x5ac   :  { %v3055_v53 = vmul.f32 0.00390625, %v3054_v50 }
 0x5ae   :  { %v3056_v54 = vadd.f32 1e-05, %v3055_v53 }
 0x5b0   :  { %4302 = vrsqrt.f32 %v3056_v54 }
 0x5bd   :  { %v4303_v61 = vpop.eup %4302 }
 0x5be   :  { %v3059_v18 = vmul.f32 %v4303_v61, %v3049_v27  ;;  %v3058_v41 = vmul.f32 %v4303_v61, %v3048_v29 }
 0x5c0   :  { %v3069_v25 = vmul.f32 %v3067_v60, %v3059_v18  ;;  %v3068_v2 = vmul.f32 %v3063_v55, %v3058_v41 }
 0x5c2   :  { %v3079_v3 = vadd.f32 %v3077_v48, %v3069_v25  ;;  %v3078_v4 = vadd.f32 %v3073_v14, %v3068_v2 }
 0x5c4   :  { %v3081_v63 = vmax.f32 %v3079_v3, 0.0  ;;  %v3080_v5 = vmax.f32 %v3078_v4, 0.0 }
 0x5c6   :  { %v3083_v31 = vpack.c.bf16 %v3081_v63, %v3081_v63  ;;  %v3082_v26 = vpack.c.bf16 %v3080_v5, %v3080_v5 }
 0x5c8   :  { %3248 = vmatprep.mubr.bf16.mxu0 %v3083_v31 }
 0x5c9   :  { %3249 = vmatmul.mubr.bf16.vlgmr.msra.gmra.mxu0 %v3082_v26 }
 0x689   :  { %v3690_v6 = vpop.f32.mrf.mxu0 }
 0x68b   :  { %v3691_v9 = vpop.f32.mrf.mxu0 }
 0x68c   :  { %v3692_v49 = vadd.f32 %v3691_v9, %v3690_v6 }
 0x68d   :  { %v3693_v57 = vpop.f32.mrf.mxu0 }
 0x68e   :  { %v3251_v1 = vadd.f32 %v3692_v49, %v3119_v8 }
 0x68f   :  { %v3694_v59 = vpop.f32.mrf.mxu0 }
 0x690   :  { %3256 = vst [vmem:[#allocation11] sm:$0xff] %v3251_v1 }
 0x691   :  { %4415 = shalt.err (!%p4412_p1)
}
 0x692   :  { %3266 = dma.vmem_to_hbm [thread:$0]  %s3264_s4, 128, %s4667_s5, [#allocation4]  }
 0x693   :  { %4430 = dma.done.wait [#allocation4], 128  }
 0x694   :  { %4431 = vsyncadd [#allocation4], 4294967168 }
 0x695   :  { %3270 = vsyncpa [#allocation3], 1 }
 0x696   :  { %3271 = vsyncpa [#allocation6], 1 }
 0x697   :  { %3272 = vsyncpa [#allocation9], 1 }
 0x698   :  { %3273 = vsyncpa [#allocation4], 1 }

</bundles_post_ra>
